<compile_context>
chip_gen: v7x
topology: tpu7x:2x2x1
jax: 0.10.0
libtpu: 0.0.40
codegen_flags: <defaults>
</compile_context>

<pallas_src>
import jax
import jax.numpy as jnp
from jax.experimental import pallas as pl
from jax.experimental.pallas import tpu as pltpu


_F32_MIN = float(jnp.finfo(jnp.float32).min)   # plain Python float -> safe literal


def _round_up(x, m):
    return ((x + m - 1) // m) * m


# ---------------------------------------------------------------------------
# Kernel 1: row scatter (add / max / set).
# The (num_out, C) output stays resident in VMEM across the point-tile grid
# (accumulator pattern, axis marked "arbitrary").  Each point performs one
# dynamic single-row read-modify-write instead of touching the whole output.
# ---------------------------------------------------------------------------
def _make_scatter_kernel(tile_p, op, init):
    def kernel(idx_ref, feats_ref, o_ref):
        @pl.when(pl.program_id(0) == 0)
        def _init():
            o_ref[...] = jnp.full(o_ref.shape, init, o_ref.dtype)

        base = pl.program_id(0) * tile_p
        for j in range(tile_p):                       # static unroll
            r = idx_ref[base + j]                     # scalar from SMEM prefetch
            row = feats_ref[pl.ds(j, 1), :]           # (1, C) static slice
            if op == "set":
                o_ref[pl.ds(r, 1), :] = row
            elif op == "max":
                o_ref[pl.ds(r, 1), :] = jnp.maximum(o_ref[pl.ds(r, 1), :], row)
            else:  # "add"
                o_ref[pl.ds(r, 1), :] = o_ref[pl.ds(r, 1), :] + row

    return kernel


def scatter_rows(feats, idx, num_out, *, op, tile_p=64):
    """out[idx[p], :] <op>= feats[p, :]  with op in {"add", "max", "set"}.

    "add": zero init (segment sum).
    "max": float32.min init (matches torch scatterMax empty-voxel fill).
    "set": zero init, last write wins; caller must guarantee unique idx
           (true for dense(): at most one voxel per BEV cell).
    Padded points are made no-ops ("add"/"max") or routed to trash rows ("set").
    """
    n, c = feats.shape
    tile_p = min(tile_p, _round_up(n, 8))
    n_pad = _round_up(n, tile_p)

    if op == "max":
        init, pad_val, pad_idx = _F32_MIN, _F32_MIN, 0      # max(x, min) == x
        num_out_pad = _round_up(num_out, 8)
    elif op == "add":
        init, pad_val, pad_idx = 0.0, 0.0, 0                 # x + 0 == x
        num_out_pad = _round_up(num_out, 8)
    elif op == "set":
        init, pad_val = 0.0, 0.0
        num_out_pad = _round_up(num_out, 8) + 8               # trash rows
        pad_idx = num_out                                     # first trash row
    else:
        raise ValueError(op)

    fp = jnp.pad(feats.astype(jnp.float32), ((0, n_pad - n), (0, 0)),
                 constant_values=pad_val)
    ip = jnp.pad(idx.astype(jnp.int32), (0, n_pad - n), constant_values=pad_idx)

    kernel = _make_scatter_kernel(tile_p, op, init)
    out = pl.pallas_call(
        kernel,
        out_shape=jax.ShapeDtypeStruct((num_out_pad, c), jnp.float32),
        grid_spec=pltpu.PrefetchScalarGridSpec(
            num_scalar_prefetch=1,
            grid=(n_pad // tile_p,),
            in_specs=[pl.BlockSpec((tile_p, c), lambda i, idx_r: (i, 0))],
            out_specs=pl.BlockSpec((num_out_pad, c), lambda i, idx_r: (0, 0)),
        ),
        compiler_params=pltpu.CompilerParams(
            dimension_semantics=("arbitrary",)),
    )(ip, fp)
    return out[:num_out]


# ---------------------------------------------------------------------------
# Kernel 2: fused feature build + Linear(10,64,no bias) + BN(eval) + ReLU.
# feature @ W == coord @ (W[0:3]+W[4:7]) + intensity*W[3] - mean @ W[4:7]
#                + local @ W[7:10]; BN scale folded into the weight columns.
# ---------------------------------------------------------------------------
def _fused_fc_kernel(coord_ref, inten_ref, mean_ref, local_ref,
                     wc_ref, wi_ref, wm_ref, wl_ref, b_ref, o_ref):
    acc = jnp.dot(coord_ref[...], wc_ref[...], preferred_element_type=jnp.float32)
    acc = acc + jnp.dot(mean_ref[...], wm_ref[...],
                        preferred_element_type=jnp.float32)
    acc = acc + jnp.dot(local_ref[...], wl_ref[...],
                        preferred_element_type=jnp.float32)
    acc = acc + inten_ref[...] * wi_ref[...]          # (tn,1)*(1,C) VPU broadcast
    o_ref[...] = jnp.maximum(acc + b_ref[...], 0.0)


def fused_point_fc(coord, inten, pmean, local, wc, wi, wm, wl, bias, tile_n=512):
    n = coord.shape[0]
    c = wc.shape[1]
    tile_n = min(tile_n, _round_up(n, 8))
    n_pad = _round_up(n, tile_n)

    def pad(x):
        return jnp.pad(x.astype(jnp.float32), ((0, n_pad - n), (0, 0)))

    out = pl.pallas_call(
        _fused_fc_kernel,
        out_shape=jax.ShapeDtypeStruct((n_pad, c), jnp.float32),
        grid=(n_pad // tile_n,),
        in_specs=[
            pl.BlockSpec((tile_n, 3), lambda i: (i, 0)),
            pl.BlockSpec((tile_n, 1), lambda i: (i, 0)),
            pl.BlockSpec((tile_n, 3), lambda i: (i, 0)),
            pl.BlockSpec((tile_n, 3), lambda i: (i, 0)),
            pl.BlockSpec((3, c), lambda i: (0, 0)),
            pl.BlockSpec((1, c), lambda i: (0, 0)),
            pl.BlockSpec((3, c), lambda i: (0, 0)),
            pl.BlockSpec((3, c), lambda i: (0, 0)),
            pl.BlockSpec((1, c), lambda i: (0, 0)),
        ],
        out_specs=pl.BlockSpec((tile_n, c), lambda i: (i, 0)),
        compiler_params=pltpu.CompilerParams(
            dimension_semantics=("parallel",)),
    )(pad(coord), pad(inten), pad(pmean), pad(local), wc, wi, wm, wl, bias)
    return out[:n]


# ---------------------------------------------------------------------------
# Parameter folding: eval-mode BN into the Linear weight/bias, split per group.
# ---------------------------------------------------------------------------
def fold_params(w, gamma, beta, running_mean, running_var, eps=1e-3):
    scale = gamma / jnp.sqrt(running_var + eps)          # (64,)
    bias = beta - running_mean * scale                   # (64,)
    w_eff = w * scale[None, :]                           # (10, 64)
    return {
        "wc": w_eff[0:3] + w_eff[4:7],   # coord appears in cols 0:3 and 4:7
        "wi": w_eff[3:4],                # intensity
        "wm": -w_eff[4:7],               # minus point_mean
        "wl": w_eff[7:10],               # local coordinate
        "bias": bias[None, :],
    }


# ---------------------------------------------------------------------------
# MVFFeatureNetDVP.forward
# ---------------------------------------------------------------------------
def mvf_feature_net_dvp_forward(params, input_dict, bev_h, bev_w):
    batch_size = input_dict["batch_size"]
    coord = input_dict["bev_coordinate"]               # (N, 3) f32
    local = input_dict["bev_local_coordinate"]         # (N, 3) f32
    inten = input_dict["intensity"]                    # (N,)   f32
    pv = input_dict["bev_mapping_pv"]                  # (N,)   i32 point -> voxel
    vf = input_dict["bev_mapping_vf"][:, :3]           # (Vb,3) i32 voxel -> (b,h,w)
    n_vox = vf.shape[0]

    # scatterMean: one Pallas scatter-add producing per-voxel [sum(xyz), count],
    # then gather the voxel mean back to the points (torch helper returns this).
    ones = jnp.ones((coord.shape[0], 1), jnp.float32)
    coord_aug = jnp.concatenate([coord, ones], axis=1)            # (N, 4)
    sums = scatter_rows(coord_aug, pv, n_vox, op="add")           # (Vb, 4)
    vox_mean = sums[:, :3] / jnp.maximum(sums[:, 3:4], 1.0)       # (Vb, 3)
    point_mean = jnp.take(vox_mean, pv, axis=0)                   # (N, 3)

    # Fused feature build + Linear + BN(eval) + ReLU.
    fc = fused_point_fc(coord, inten[:, None], point_mean, local,
                        params["wc"], params["wi"], params["wm"],
                        params["wl"], params["bias"])             # (N, 64)

    # scatterMax: point features -> voxel features (f32.min init like torch).
    maxpool = scatter_rows(fc, pv, n_vox, op="max")               # (Vb, 64)

    # dense(): place voxel rows on the flattened (B*H*W) grid, zeros elsewhere.
    flat = (vf[:, 0] * (bev_h * bev_w) + vf[:, 1] * bev_w
            + vf[:, 2]).astype(jnp.int32)                         # (Vb,)
    dense_flat = scatter_rows(maxpool, flat, batch_size * bev_h * bev_w,
                              op="set")                           # (B*H*W, 64)
    out = dense_flat.reshape(batch_size, bev_h, bev_w, 64)
    return jnp.transpose(out, (0, 3, 1, 2))                       # NCHW


# ---------------------------------------------------------------------------
# Pure-JAX reference of the PyTorch forward (for a correctness check).
# ---------------------------------------------------------------------------
def _reference_forward(w, gamma, beta, rmean, rvar, eps, input_dict, bev_h, bev_w):
    coord = input_dict["bev_coordinate"]
    local = input_dict["bev_local_coordinate"]
    inten = input_dict["intensity"]
    pv = input_dict["bev_mapping_pv"]
    vf = input_dict["bev_mapping_vf"][:, :3]
    bsz = input_dict["batch_size"]
    n_vox = vf.shape[0]

    sums = jax.ops.segment_sum(coord, pv, num_segments=n_vox)
    cnts = jax.ops.segment_sum(jnp.ones((coord.shape[0],), jnp.float32), pv,
                               num_segments=n_vox)
    pmean = (sums / jnp.maximum(cnts, 1.0)[:, None])[pv]
    feat = jnp.concatenate([coord, inten[:, None], coord - pmean, local], axis=1)
    x = jnp.dot(feat, w, precision=jax.lax.Precision.HIGHEST)
    x = (x - rmean) / jnp.sqrt(rvar + eps) * gamma + beta
    x = jnp.maximum(x, 0.0)
    maxp = jax.ops.segment_max(x, pv, num_segments=n_vox)
    flat = vf[:, 0] * (bev_h * bev_w) + vf[:, 1] * bev_w + vf[:, 2]
    dense = jnp.zeros((bsz * bev_h * bev_w, 64), jnp.float32).at[flat].set(maxp)
    return jnp.transpose(dense.reshape(bsz, bev_h, bev_w, 64), (0, 3, 1, 2))


# ---------------------------------------------------------------------------
if __name__ == "__main__":
    key = jax.random.PRNGKey(0)
    kw, kg, kb, km, kv, k1, k2, k3, k4 = jax.random.split(key, 9)

    batch_size, bev_h, bev_w = 2, 8, 8
    n_points, n_vox = 64, 24
    eps = 1e-3

    # Module parameters: Linear(10, 64, bias=False) weight stored as (in, out)
    # and BatchNorm1d(64, eps=1e-3) eval statistics (non-trivial to exercise folding).
    w = jax.random.normal(kw, (10, 64), jnp.float32) * 0.3
    gamma = 1.0 + 0.1 * jax.random.normal(kg, (64,), jnp.float32)
    beta = 0.1 * jax.random.normal(kb, (64,), jnp.float32)
    running_mean = 0.1 * jax.random.normal(km, (64,), jnp.float32)
    running_var = jax.random.uniform(kv, (64,), jnp.float32, 0.5, 1.5)
    params = fold_params(w, gamma, beta, running_mean, running_var, eps)

    # Deterministic point / voxel data; every voxel gets at least one point and
    # every voxel maps to a unique BEV cell.
    coord = jax.random.normal(k1, (n_points, 3), jnp.float32)
    local = jax.random.normal(k2, (n_points, 3), jnp.float32)
    inten = jax.random.uniform(k3, (n_points,), jnp.float32)
    pv = jnp.arange(n_points, dtype=jnp.int32) % n_vox
    lin = jax.random.permutation(k4, batch_size * bev_h * bev_w)[:n_vox]
    vf = jnp.stack([lin // (bev_h * bev_w),
                    (lin % (bev_h * bev_w)) // bev_w,
                    lin % bev_w], axis=1).astype(jnp.int32)

    input_dict = {
        "batch_size": batch_size,
        "bev_coordinate": coord,
        "bev_local_coordinate": local,
        "intensity": inten,
        "bev_mapping_pv": pv,
        "bev_mapping_vf": vf,
    }

    out = mvf_feature_net_dvp_forward(params, input_dict, bev_h, bev_w)
    out = jax.block_until_ready(out)
    assert out.shape == (batch_size, 64, bev_h, bev_w), out.shape
    assert bool(jnp.all(jnp.isfinite(out)))

    ref = _reference_forward(w, gamma, beta, running_mean, running_var, eps,
                             input_dict, bev_h, bev_w)
    ref = jax.block_until_ready(ref)
    assert bool(jnp.allclose(out, ref, atol=5e-2, rtol=5e-2)), (
        "max abs diff %f" % float(jnp.max(jnp.abs(out - ref))))

    print("KERNEL_OK")
</pallas_src>

<mosaic_0001>
module attributes {stable_mosaic.version = 11 : i64} {
  func.func @kernel(%arg0: i32, %arg1: memref<64xi32, #tpu.memory_space<smem>>, %arg2: memref<64x4xf32, #tpu.memory_space<vmem>>, %arg3: memref<24x4xf32, #tpu.memory_space<vmem>>) attributes {dimension_semantics = [#tpu.dimension_semantics<arbitrary>], iteration_bounds = array<i64: 1>, scalar_prefetch = 1 : i64, scratch_operands = 0 : i64, tpu.core_type = #tpu.core_type<tc>, window_params = [{transform_indices = @transform_0, window_bounds = array<i64: 64, 4>}, {pipeline_mode = #tpu.pipeline_mode<synchronous>, transform_indices = @transform_1, window_bounds = array<i64: 24, 4>}]} {
    %c0_i32 = arith.constant 0 : i32
    %0 = arith.cmpi eq, %arg0, %c0_i32 : i32
    %1 = arith.extui %0 : i1 to i32
    %c0_i32_0 = arith.constant 0 : i32
    %2 = arith.cmpi ne, %1, %c0_i32_0 : i32
    scf.if %2 {
      %cst = arith.constant 0.000000e+00 : f32
      %580 = vector.broadcast %cst : f32 to vector<24x4xf32>
      %c0_194 = arith.constant 0 : index
      %c0_195 = arith.constant 0 : index
      %581 = vector.load %arg3[%c0_194, %c0_195] : memref<24x4xf32, #tpu.memory_space<vmem>>, vector<24x4xf32>
      tpu.vector_store %arg3[%c0_194, %c0_195], %580 {strides = array<i32>} : memref<24x4xf32, #tpu.memory_space<vmem>>, vector<24x4xf32>,
    } else {
    }
    %c64_i32 = arith.constant 64 : i32
    %3 = arith.muli %arg0, %c64_i32 : i32
    %c0_i32_1 = arith.constant 0 : i32
    %4 = arith.addi %3, %c0_i32_1 : i32
    %5 = arith.index_cast %4 : i32 to index
    %6 = memref.load %arg1[%5] : memref<64xi32, #tpu.memory_space<smem>>
    %c0 = arith.constant 0 : index
    %c0_2 = arith.constant 0 : index
    %7 = vector.load %arg2[%c0, %c0_2] : memref<64x4xf32, #tpu.memory_space<vmem>>, vector<1x4xf32>
    %8 = arith.index_cast %6 : i32 to index
    %c0_3 = arith.constant 0 : index
    %9 = vector.load %arg3[%8, %c0_3] : memref<24x4xf32, #tpu.memory_space<vmem>>, vector<1x4xf32>
    %10 = arith.addf %9, %7 : vector<1x4xf32>
    %11 = arith.index_cast %6 : i32 to index
    %c0_4 = arith.constant 0 : index
    %12 = vector.load %arg3[%11, %c0_4] : memref<24x4xf32, #tpu.memory_space<vmem>>, vector<1x4xf32>
    tpu.vector_store %arg3[%11, %c0_4], %10 {strides = array<i32>} : memref<24x4xf32, #tpu.memory_space<vmem>>, vector<1x4xf32>,
    %c1_i32 = arith.constant 1 : i32
    %13 = arith.addi %3, %c1_i32 : i32
    %14 = arith.index_cast %13 : i32 to index
    %15 = memref.load %arg1[%14] : memref<64xi32, #tpu.memory_space<smem>>
    %c1 = arith.constant 1 : index
    %c0_5 = arith.constant 0 : index
    %16 = vector.load %arg2[%c1, %c0_5] : memref<64x4xf32, #tpu.memory_space<vmem>>, vector<1x4xf32>
    %17 = arith.index_cast %15 : i32 to index
    %c0_6 = arith.constant 0 : index
    %18 = vector.load %arg3[%17, %c0_6] : memref<24x4xf32, #tpu.memory_space<vmem>>, vector<1x4xf32>
    %19 = arith.addf %18, %16 : vector<1x4xf32>
    %20 = arith.index_cast %15 : i32 to index
    %c0_7 = arith.constant 0 : index
    %21 = vector.load %arg3[%20, %c0_7] : memref<24x4xf32, #tpu.memory_space<vmem>>, vector<1x4xf32>
    tpu.vector_store %arg3[%20, %c0_7], %19 {strides = array<i32>} : memref<24x4xf32, #tpu.memory_space<vmem>>, vector<1x4xf32>,
    %c2_i32 = arith.constant 2 : i32
    %22 = arith.addi %3, %c2_i32 : i32
    %23 = arith.index_cast %22 : i32 to index
    %24 = memref.load %arg1[%23] : memref<64xi32, #tpu.memory_space<smem>>
    %c2 = arith.constant 2 : index
    %c0_8 = arith.constant 0 : index
    %25 = vector.load %arg2[%c2, %c0_8] : memref<64x4xf32, #tpu.memory_space<vmem>>, vector<1x4xf32>
    %26 = arith.index_cast %24 : i32 to index
    %c0_9 = arith.constant 0 : index
    %27 = vector.load %arg3[%26, %c0_9] : memref<24x4xf32, #tpu.memory_space<vmem>>, vector<1x4xf32>
    %28 = arith.addf %27, %25 : vector<1x4xf32>
    %29 = arith.index_cast %24 : i32 to index
    %c0_10 = arith.constant 0 : index
    %30 = vector.load %arg3[%29, %c0_10] : memref<24x4xf32, #tpu.memory_space<vmem>>, vector<1x4xf32>
    tpu.vector_store %arg3[%29, %c0_10], %28 {strides = array<i32>} : memref<24x4xf32, #tpu.memory_space<vmem>>, vector<1x4xf32>,
    %c3_i32 = arith.constant 3 : i32
    %31 = arith.addi %3, %c3_i32 : i32
    %32 = arith.index_cast %31 : i32 to index
    %33 = memref.load %arg1[%32] : memref<64xi32, #tpu.memory_space<smem>>
    %c3 = arith.constant 3 : index
    %c0_11 = arith.constant 0 : index
    %34 = vector.load %arg2[%c3, %c0_11] : memref<64x4xf32, #tpu.memory_space<vmem>>, vector<1x4xf32>
    %35 = arith.index_cast %33 : i32 to index
    %c0_12 = arith.constant 0 : index
    %36 = vector.load %arg3[%35, %c0_12] : memref<24x4xf32, #tpu.memory_space<vmem>>, vector<1x4xf32>
    %37 = arith.addf %36, %34 : vector<1x4xf32>
    %38 = arith.index_cast %33 : i32 to index
    %c0_13 = arith.constant 0 : index
    %39 = vector.load %arg3[%38, %c0_13] : memref<24x4xf32, #tpu.memory_space<vmem>>, vector<1x4xf32>
    tpu.vector_store %arg3[%38, %c0_13], %37 {strides = array<i32>} : memref<24x4xf32, #tpu.memory_space<vmem>>, vector<1x4xf32>,
    %c4_i32 = arith.constant 4 : i32
    %40 = arith.addi %3, %c4_i32 : i32
    %41 = arith.index_cast %40 : i32 to index
    %42 = memref.load %arg1[%41] : memref<64xi32, #tpu.memory_space<smem>>
    %c4 = arith.constant 4 : index
    %c0_14 = arith.constant 0 : index
    %43 = vector.load %arg2[%c4, %c0_14] : memref<64x4xf32, #tpu.memory_space<vmem>>, vector<1x4xf32>
    %44 = arith.index_cast %42 : i32 to index
    %c0_15 = arith.constant 0 : index
    %45 = vector.load %arg3[%44, %c0_15] : memref<24x4xf32, #tpu.memory_space<vmem>>, vector<1x4xf32>
    %46 = arith.addf %45, %43 : vector<1x4xf32>
    %47 = arith.index_cast %42 : i32 to index
    %c0_16 = arith.constant 0 : index
    %48 = vector.load %arg3[%47, %c0_16] : memref<24x4xf32, #tpu.memory_space<vmem>>, vector<1x4xf32>
    tpu.vector_store %arg3[%47, %c0_16], %46 {strides = array<i32>} : memref<24x4xf32, #tpu.memory_space<vmem>>, vector<1x4xf32>,
    %c5_i32 = arith.constant 5 : i32
    %49 = arith.addi %3, %c5_i32 : i32
    %50 = arith.index_cast %49 : i32 to index
    %51 = memref.load %arg1[%50] : memref<64xi32, #tpu.memory_space<smem>>
    %c5 = arith.constant 5 : index
    %c0_17 = arith.constant 0 : index
    %52 = vector.load %arg2[%c5, %c0_17] : memref<64x4xf32, #tpu.memory_space<vmem>>, vector<1x4xf32>
    %53 = arith.index_cast %51 : i32 to index
    %c0_18 = arith.constant 0 : index
    %54 = vector.load %arg3[%53, %c0_18] : memref<24x4xf32, #tpu.memory_space<vmem>>, vector<1x4xf32>
    %55 = arith.addf %54, %52 : vector<1x4xf32>
    %56 = arith.index_cast %51 : i32 to index
    %c0_19 = arith.constant 0 : index
    %57 = vector.load %arg3[%56, %c0_19] : memref<24x4xf32, #tpu.memory_space<vmem>>, vector<1x4xf32>
    tpu.vector_store %arg3[%56, %c0_19], %55 {strides = array<i32>} : memref<24x4xf32, #tpu.memory_space<vmem>>, vector<1x4xf32>,
    %c6_i32 = arith.constant 6 : i32
    %58 = arith.addi %3, %c6_i32 : i32
    %59 = arith.index_cast %58 : i32 to index
    %60 = memref.load %arg1[%59] : memref<64xi32, #tpu.memory_space<smem>>
    %c6 = arith.constant 6 : index
    %c0_20 = arith.constant 0 : index
    %61 = vector.load %arg2[%c6, %c0_20] : memref<64x4xf32, #tpu.memory_space<vmem>>, vector<1x4xf32>
    %62 = arith.index_cast %60 : i32 to index
    %c0_21 = arith.constant 0 : index
    %63 = vector.load %arg3[%62, %c0_21] : memref<24x4xf32, #tpu.memory_space<vmem>>, vector<1x4xf32>
    %64 = arith.addf %63, %61 : vector<1x4xf32>
    %65 = arith.index_cast %60 : i32 to index
    %c0_22 = arith.constant 0 : index
    %66 = vector.load %arg3[%65, %c0_22] : memref<24x4xf32, #tpu.memory_space<vmem>>, vector<1x4xf32>
    tpu.vector_store %arg3[%65, %c0_22], %64 {strides = array<i32>} : memref<24x4xf32, #tpu.memory_space<vmem>>, vector<1x4xf32>,
    %c7_i32 = arith.constant 7 : i32
    %67 = arith.addi %3, %c7_i32 : i32
    %68 = arith.index_cast %67 : i32 to index
    %69 = memref.load %arg1[%68] : memref<64xi32, #tpu.memory_space<smem>>
    %c7 = arith.constant 7 : index
    %c0_23 = arith.constant 0 : index
    %70 = vector.load %arg2[%c7, %c0_23] : memref<64x4xf32, #tpu.memory_space<vmem>>, vector<1x4xf32>
    %71 = arith.index_cast %69 : i32 to index
    %c0_24 = arith.constant 0 : index
    %72 = vector.load %arg3[%71, %c0_24] : memref<24x4xf32, #tpu.memory_space<vmem>>, vector<1x4xf32>
    %73 = arith.addf %72, %70 : vector<1x4xf32>
    %74 = arith.index_cast %69 : i32 to index
    %c0_25 = arith.constant 0 : index
    %75 = vector.load %arg3[%74, %c0_25] : memref<24x4xf32, #tpu.memory_space<vmem>>, vector<1x4xf32>
    tpu.vector_store %arg3[%74, %c0_25], %73 {strides = array<i32>} : memref<24x4xf32, #tpu.memory_space<vmem>>, vector<1x4xf32>,
    %c8_i32 = arith.constant 8 : i32
    %76 = arith.addi %3, %c8_i32 : i32
    %77 = arith.index_cast %76 : i32 to index
    %78 = memref.load %arg1[%77] : memref<64xi32, #tpu.memory_space<smem>>
    %c8 = arith.constant 8 : index
    %c0_26 = arith.constant 0 : index
    %79 = vector.load %arg2[%c8, %c0_26] : memref<64x4xf32, #tpu.memory_space<vmem>>, vector<1x4xf32>
    %80 = arith.index_cast %78 : i32 to index
    %c0_27 = arith.constant 0 : index
    %81 = vector.load %arg3[%80, %c0_27] : memref<24x4xf32, #tpu.memory_space<vmem>>, vector<1x4xf32>
    %82 = arith.addf %81, %79 : vector<1x4xf32>
    %83 = arith.index_cast %78 : i32 to index
    %c0_28 = arith.constant 0 : index
    %84 = vector.load %arg3[%83, %c0_28] : memref<24x4xf32, #tpu.memory_space<vmem>>, vector<1x4xf32>
    tpu.vector_store %arg3[%83, %c0_28], %82 {strides = array<i32>} : memref<24x4xf32, #tpu.memory_space<vmem>>, vector<1x4xf32>,
    %c9_i32 = arith.constant 9 : i32
    %85 = arith.addi %3, %c9_i32 : i32
    %86 = arith.index_cast %85 : i32 to index
    %87 = memref.load %arg1[%86] : memref<64xi32, #tpu.memory_space<smem>>
    %c9 = arith.constant 9 : index
    %c0_29 = arith.constant 0 : index
    %88 = vector.load %arg2[%c9, %c0_29] : memref<64x4xf32, #tpu.memory_space<vmem>>, vector<1x4xf32>
    %89 = arith.index_cast %87 : i32 to index
    %c0_30 = arith.constant 0 : index
    %90 = vector.load %arg3[%89, %c0_30] : memref<24x4xf32, #tpu.memory_space<vmem>>, vector<1x4xf32>
    %91 = arith.addf %90, %88 : vector<1x4xf32>
    %92 = arith.index_cast %87 : i32 to index
    %c0_31 = arith.constant 0 : index
    %93 = vector.load %arg3[%92, %c0_31] : memref<24x4xf32, #tpu.memory_space<vmem>>, vector<1x4xf32>
    tpu.vector_store %arg3[%92, %c0_31], %91 {strides = array<i32>} : memref<24x4xf32, #tpu.memory_space<vmem>>, vector<1x4xf32>,
    %c10_i32 = arith.constant 10 : i32
    %94 = arith.addi %3, %c10_i32 : i32
    %95 = arith.index_cast %94 : i32 to index
    %96 = memref.load %arg1[%95] : memref<64xi32, #tpu.memory_space<smem>>
    %c10 = arith.constant 10 : index
    %c0_32 = arith.constant 0 : index
    %97 = vector.load %arg2[%c10, %c0_32] : memref<64x4xf32, #tpu.memory_space<vmem>>, vector<1x4xf32>
    %98 = arith.index_cast %96 : i32 to index
    %c0_33 = arith.constant 0 : index
    %99 = vector.load %arg3[%98, %c0_33] : memref<24x4xf32, #tpu.memory_space<vmem>>, vector<1x4xf32>
    %100 = arith.addf %99, %97 : vector<1x4xf32>
    %101 = arith.index_cast %96 : i32 to index
    %c0_34 = arith.constant 0 : index
    %102 = vector.load %arg3[%101, %c0_34] : memref<24x4xf32, #tpu.memory_space<vmem>>, vector<1x4xf32>
    tpu.vector_store %arg3[%101, %c0_34], %100 {strides = array<i32>} : memref<24x4xf32, #tpu.memory_space<vmem>>, vector<1x4xf32>,
    %c11_i32 = arith.constant 11 : i32
    %103 = arith.addi %3, %c11_i32 : i32
    %104 = arith.index_cast %103 : i32 to index
    %105 = memref.load %arg1[%104] : memref<64xi32, #tpu.memory_space<smem>>
    %c11 = arith.constant 11 : index
    %c0_35 = arith.constant 0 : index
    %106 = vector.load %arg2[%c11, %c0_35] : memref<64x4xf32, #tpu.memory_space<vmem>>, vector<1x4xf32>
    %107 = arith.index_cast %105 : i32 to index
    %c0_36 = arith.constant 0 : index
    %108 = vector.load %arg3[%107, %c0_36] : memref<24x4xf32, #tpu.memory_space<vmem>>, vector<1x4xf32>
    %109 = arith.addf %108, %106 : vector<1x4xf32>
    %110 = arith.index_cast %105 : i32 to index
    %c0_37 = arith.constant 0 : index
    %111 = vector.load %arg3[%110, %c0_37] : memref<24x4xf32, #tpu.memory_space<vmem>>, vector<1x4xf32>
    tpu.vector_store %arg3[%110, %c0_37], %109 {strides = array<i32>} : memref<24x4xf32, #tpu.memory_space<vmem>>, vector<1x4xf32>,
    %c12_i32 = arith.constant 12 : i32
    %112 = arith.addi %3, %c12_i32 : i32
    %113 = arith.index_cast %112 : i32 to index
    %114 = memref.load %arg1[%113] : memref<64xi32, #tpu.memory_space<smem>>
    %c12 = arith.constant 12 : index
    %c0_38 = arith.constant 0 : index
    %115 = vector.load %arg2[%c12, %c0_38] : memref<64x4xf32, #tpu.memory_space<vmem>>, vector<1x4xf32>
    %116 = arith.index_cast %114 : i32 to index
    %c0_39 = arith.constant 0 : index
    %117 = vector.load %arg3[%116, %c0_39] : memref<24x4xf32, #tpu.memory_space<vmem>>, vector<1x4xf32>
    %118 = arith.addf %117, %115 : vector<1x4xf32>
    %119 = arith.index_cast %114 : i32 to index
    %c0_40 = arith.constant 0 : index
    %120 = vector.load %arg3[%119, %c0_40] : memref<24x4xf32, #tpu.memory_space<vmem>>, vector<1x4xf32>
    tpu.vector_store %arg3[%119, %c0_40], %118 {strides = array<i32>} : memref<24x4xf32, #tpu.memory_space<vmem>>, vector<1x4xf32>,
    %c13_i32 = arith.constant 13 : i32
    %121 = arith.addi %3, %c13_i32 : i32
    %122 = arith.index_cast %121 : i32 to index
    %123 = memref.load %arg1[%122] : memref<64xi32, #tpu.memory_space<smem>>
    %c13 = arith.constant 13 : index
    %c0_41 = arith.constant 0 : index
    %124 = vector.load %arg2[%c13, %c0_41] : memref<64x4xf32, #tpu.memory_space<vmem>>, vector<1x4xf32>
    %125 = arith.index_cast %123 : i32 to index
    %c0_42 = arith.constant 0 : index
    %126 = vector.load %arg3[%125, %c0_42] : memref<24x4xf32, #tpu.memory_space<vmem>>, vector<1x4xf32>
    %127 = arith.addf %126, %124 : vector<1x4xf32>
    %128 = arith.index_cast %123 : i32 to index
    %c0_43 = arith.constant 0 : index
    %129 = vector.load %arg3[%128, %c0_43] : memref<24x4xf32, #tpu.memory_space<vmem>>, vector<1x4xf32>
    tpu.vector_store %arg3[%128, %c0_43], %127 {strides = array<i32>} : memref<24x4xf32, #tpu.memory_space<vmem>>, vector<1x4xf32>,
    %c14_i32 = arith.constant 14 : i32
    %130 = arith.addi %3, %c14_i32 : i32
    %131 = arith.index_cast %130 : i32 to index
    %132 = memref.load %arg1[%131] : memref<64xi32, #tpu.memory_space<smem>>
    %c14 = arith.constant 14 : index
    %c0_44 = arith.constant 0 : index
    %133 = vector.load %arg2[%c14, %c0_44] : memref<64x4xf32, #tpu.memory_space<vmem>>, vector<1x4xf32>
    %134 = arith.index_cast %132 : i32 to index
    %c0_45 = arith.constant 0 : index
    %135 = vector.load %arg3[%134, %c0_45] : memref<24x4xf32, #tpu.memory_space<vmem>>, vector<1x4xf32>
    %136 = arith.addf %135, %133 : vector<1x4xf32>
    %137 = arith.index_cast %132 : i32 to index
    %c0_46 = arith.constant 0 : index
    %138 = vector.load %arg3[%137, %c0_46] : memref<24x4xf32, #tpu.memory_space<vmem>>, vector<1x4xf32>
    tpu.vector_store %arg3[%137, %c0_46], %136 {strides = array<i32>} : memref<24x4xf32, #tpu.memory_space<vmem>>, vector<1x4xf32>,
    %c15_i32 = arith.constant 15 : i32
    %139 = arith.addi %3, %c15_i32 : i32
    %140 = arith.index_cast %139 : i32 to index
    %141 = memref.load %arg1[%140] : memref<64xi32, #tpu.memory_space<smem>>
    %c15 = arith.constant 15 : index
    %c0_47 = arith.constant 0 : index
    %142 = vector.load %arg2[%c15, %c0_47] : memref<64x4xf32, #tpu.memory_space<vmem>>, vector<1x4xf32>
    %143 = arith.index_cast %141 : i32 to index
    %c0_48 = arith.constant 0 : index
    %144 = vector.load %arg3[%143, %c0_48] : memref<24x4xf32, #tpu.memory_space<vmem>>, vector<1x4xf32>
    %145 = arith.addf %144, %142 : vector<1x4xf32>
    %146 = arith.index_cast %141 : i32 to index
    %c0_49 = arith.constant 0 : index
    %147 = vector.load %arg3[%146, %c0_49] : memref<24x4xf32, #tpu.memory_space<vmem>>, vector<1x4xf32>
    tpu.vector_store %arg3[%146, %c0_49], %145 {strides = array<i32>} : memref<24x4xf32, #tpu.memory_space<vmem>>, vector<1x4xf32>,
    %c16_i32 = arith.constant 16 : i32
    %148 = arith.addi %3, %c16_i32 : i32
    %149 = arith.index_cast %148 : i32 to index
    %150 = memref.load %arg1[%149] : memref<64xi32, #tpu.memory_space<smem>>
    %c16 = arith.constant 16 : index
    %c0_50 = arith.constant 0 : index
    %151 = vector.load %arg2[%c16, %c0_50] : memref<64x4xf32, #tpu.memory_space<vmem>>, vector<1x4xf32>
    %152 = arith.index_cast %150 : i32 to index
    %c0_51 = arith.constant 0 : index
    %153 = vector.load %arg3[%152, %c0_51] : memref<24x4xf32, #tpu.memory_space<vmem>>, vector<1x4xf32>
    %154 = arith.addf %153, %151 : vector<1x4xf32>
    %155 = arith.index_cast %150 : i32 to index
    %c0_52 = arith.constant 0 : index
    %156 = vector.load %arg3[%155, %c0_52] : memref<24x4xf32, #tpu.memory_space<vmem>>, vector<1x4xf32>
    tpu.vector_store %arg3[%155, %c0_52], %154 {strides = array<i32>} : memref<24x4xf32, #tpu.memory_space<vmem>>, vector<1x4xf32>,
    %c17_i32 = arith.constant 17 : i32
    %157 = arith.addi %3, %c17_i32 : i32
    %158 = arith.index_cast %157 : i32 to index
    %159 = memref.load %arg1[%158] : memref<64xi32, #tpu.memory_space<smem>>
    %c17 = arith.constant 17 : index
    %c0_53 = arith.constant 0 : index
    %160 = vector.load %arg2[%c17, %c0_53] : memref<64x4xf32, #tpu.memory_space<vmem>>, vector<1x4xf32>
    %161 = arith.index_cast %159 : i32 to index
    %c0_54 = arith.constant 0 : index
    %162 = vector.load %arg3[%161, %c0_54] : memref<24x4xf32, #tpu.memory_space<vmem>>, vector<1x4xf32>
    %163 = arith.addf %162, %160 : vector<1x4xf32>
    %164 = arith.index_cast %159 : i32 to index
    %c0_55 = arith.constant 0 : index
    %165 = vector.load %arg3[%164, %c0_55] : memref<24x4xf32, #tpu.memory_space<vmem>>, vector<1x4xf32>
    tpu.vector_store %arg3[%164, %c0_55], %163 {strides = array<i32>} : memref<24x4xf32, #tpu.memory_space<vmem>>, vector<1x4xf32>,
    %c18_i32 = arith.constant 18 : i32
    %166 = arith.addi %3, %c18_i32 : i32
    %167 = arith.index_cast %166 : i32 to index
    %168 = memref.load %arg1[%167] : memref<64xi32, #tpu.memory_space<smem>>
    %c18 = arith.constant 18 : index
    %c0_56 = arith.constant 0 : index
    %169 = vector.load %arg2[%c18, %c0_56] : memref<64x4xf32, #tpu.memory_space<vmem>>, vector<1x4xf32>
    %170 = arith.index_cast %168 : i32 to index
    %c0_57 = arith.constant 0 : index
    %171 = vector.load %arg3[%170, %c0_57] : memref<24x4xf32, #tpu.memory_space<vmem>>, vector<1x4xf32>
    %172 = arith.addf %171, %169 : vector<1x4xf32>
    %173 = arith.index_cast %168 : i32 to index
    %c0_58 = arith.constant 0 : index
    %174 = vector.load %arg3[%173, %c0_58] : memref<24x4xf32, #tpu.memory_space<vmem>>, vector<1x4xf32>
    tpu.vector_store %arg3[%173, %c0_58], %172 {strides = array<i32>} : memref<24x4xf32, #tpu.memory_space<vmem>>, vector<1x4xf32>,
    %c19_i32 = arith.constant 19 : i32
    %175 = arith.addi %3, %c19_i32 : i32
    %176 = arith.index_cast %175 : i32 to index
    %177 = memref.load %arg1[%176] : memref<64xi32, #tpu.memory_space<smem>>
    %c19 = arith.constant 19 : index
    %c0_59 = arith.constant 0 : index
    %178 = vector.load %arg2[%c19, %c0_59] : memref<64x4xf32, #tpu.memory_space<vmem>>, vector<1x4xf32>
    %179 = arith.index_cast %177 : i32 to index
    %c0_60 = arith.constant 0 : index
    %180 = vector.load %arg3[%179, %c0_60] : memref<24x4xf32, #tpu.memory_space<vmem>>, vector<1x4xf32>
    %181 = arith.addf %180, %178 : vector<1x4xf32>
    %182 = arith.index_cast %177 : i32 to index
    %c0_61 = arith.constant 0 : index
    %183 = vector.load %arg3[%182, %c0_61] : memref<24x4xf32, #tpu.memory_space<vmem>>, vector<1x4xf32>
    tpu.vector_store %arg3[%182, %c0_61], %181 {strides = array<i32>} : memref<24x4xf32, #tpu.memory_space<vmem>>, vector<1x4xf32>,
    %c20_i32 = arith.constant 20 : i32
    %184 = arith.addi %3, %c20_i32 : i32
    %185 = arith.index_cast %184 : i32 to index
    %186 = memref.load %arg1[%185] : memref<64xi32, #tpu.memory_space<smem>>
    %c20 = arith.constant 20 : index
    %c0_62 = arith.constant 0 : index
    %187 = vector.load %arg2[%c20, %c0_62] : memref<64x4xf32, #tpu.memory_space<vmem>>, vector<1x4xf32>
    %188 = arith.index_cast %186 : i32 to index
    %c0_63 = arith.constant 0 : index
    %189 = vector.load %arg3[%188, %c0_63] : memref<24x4xf32, #tpu.memory_space<vmem>>, vector<1x4xf32>
    %190 = arith.addf %189, %187 : vector<1x4xf32>
    %191 = arith.index_cast %186 : i32 to index
    %c0_64 = arith.constant 0 : index
    %192 = vector.load %arg3[%191, %c0_64] : memref<24x4xf32, #tpu.memory_space<vmem>>, vector<1x4xf32>
    tpu.vector_store %arg3[%191, %c0_64], %190 {strides = array<i32>} : memref<24x4xf32, #tpu.memory_space<vmem>>, vector<1x4xf32>,
    %c21_i32 = arith.constant 21 : i32
    %193 = arith.addi %3, %c21_i32 : i32
    %194 = arith.index_cast %193 : i32 to index
    %195 = memref.load %arg1[%194] : memref<64xi32, #tpu.memory_space<smem>>
    %c21 = arith.constant 21 : index
    %c0_65 = arith.constant 0 : index
    %196 = vector.load %arg2[%c21, %c0_65] : memref<64x4xf32, #tpu.memory_space<vmem>>, vector<1x4xf32>
    %197 = arith.index_cast %195 : i32 to index
    %c0_66 = arith.constant 0 : index
    %198 = vector.load %arg3[%197, %c0_66] : memref<24x4xf32, #tpu.memory_space<vmem>>, vector<1x4xf32>
    %199 = arith.addf %198, %196 : vector<1x4xf32>
    %200 = arith.index_cast %195 : i32 to index
    %c0_67 = arith.constant 0 : index
    %201 = vector.load %arg3[%200, %c0_67] : memref<24x4xf32, #tpu.memory_space<vmem>>, vector<1x4xf32>
    tpu.vector_store %arg3[%200, %c0_67], %199 {strides = array<i32>} : memref<24x4xf32, #tpu.memory_space<vmem>>, vector<1x4xf32>,
    %c22_i32 = arith.constant 22 : i32
    %202 = arith.addi %3, %c22_i32 : i32
    %203 = arith.index_cast %202 : i32 to index
    %204 = memref.load %arg1[%203] : memref<64xi32, #tpu.memory_space<smem>>
    %c22 = arith.constant 22 : index
    %c0_68 = arith.constant 0 : index
    %205 = vector.load %arg2[%c22, %c0_68] : memref<64x4xf32, #tpu.memory_space<vmem>>, vector<1x4xf32>
    %206 = arith.index_cast %204 : i32 to index
    %c0_69 = arith.constant 0 : index
    %207 = vector.load %arg3[%206, %c0_69] : memref<24x4xf32, #tpu.memory_space<vmem>>, vector<1x4xf32>
    %208 = arith.addf %207, %205 : vector<1x4xf32>
    %209 = arith.index_cast %204 : i32 to index
    %c0_70 = arith.constant 0 : index
    %210 = vector.load %arg3[%209, %c0_70] : memref<24x4xf32, #tpu.memory_space<vmem>>, vector<1x4xf32>
    tpu.vector_store %arg3[%209, %c0_70], %208 {strides = array<i32>} : memref<24x4xf32, #tpu.memory_space<vmem>>, vector<1x4xf32>,
    %c23_i32 = arith.constant 23 : i32
    %211 = arith.addi %3, %c23_i32 : i32
    %212 = arith.index_cast %211 : i32 to index
    %213 = memref.load %arg1[%212] : memref<64xi32, #tpu.memory_space<smem>>
    %c23 = arith.constant 23 : index
    %c0_71 = arith.constant 0 : index
    %214 = vector.load %arg2[%c23, %c0_71] : memref<64x4xf32, #tpu.memory_space<vmem>>, vector<1x4xf32>
    %215 = arith.index_cast %213 : i32 to index
    %c0_72 = arith.constant 0 : index
    %216 = vector.load %arg3[%215, %c0_72] : memref<24x4xf32, #tpu.memory_space<vmem>>, vector<1x4xf32>
    %217 = arith.addf %216, %214 : vector<1x4xf32>
    %218 = arith.index_cast %213 : i32 to index
    %c0_73 = arith.constant 0 : index
    %219 = vector.load %arg3[%218, %c0_73] : memref<24x4xf32, #tpu.memory_space<vmem>>, vector<1x4xf32>
    tpu.vector_store %arg3[%218, %c0_73], %217 {strides = array<i32>} : memref<24x4xf32, #tpu.memory_space<vmem>>, vector<1x4xf32>,
    %c24_i32 = arith.constant 24 : i32
    %220 = arith.addi %3, %c24_i32 : i32
    %221 = arith.index_cast %220 : i32 to index
    %222 = memref.load %arg1[%221] : memref<64xi32, #tpu.memory_space<smem>>
    %c24 = arith.constant 24 : index
    %c0_74 = arith.constant 0 : index
    %223 = vector.load %arg2[%c24, %c0_74] : memref<64x4xf32, #tpu.memory_space<vmem>>, vector<1x4xf32>
    %224 = arith.index_cast %222 : i32 to index
    %c0_75 = arith.constant 0 : index
    %225 = vector.load %arg3[%224, %c0_75] : memref<24x4xf32, #tpu.memory_space<vmem>>, vector<1x4xf32>
    %226 = arith.addf %225, %223 : vector<1x4xf32>
    %227 = arith.index_cast %222 : i32 to index
    %c0_76 = arith.constant 0 : index
    %228 = vector.load %arg3[%227, %c0_76] : memref<24x4xf32, #tpu.memory_space<vmem>>, vector<1x4xf32>
    tpu.vector_store %arg3[%227, %c0_76], %226 {strides = array<i32>} : memref<24x4xf32, #tpu.memory_space<vmem>>, vector<1x4xf32>,
    %c25_i32 = arith.constant 25 : i32
    %229 = arith.addi %3, %c25_i32 : i32
    %230 = arith.index_cast %229 : i32 to index
    %231 = memref.load %arg1[%230] : memref<64xi32, #tpu.memory_space<smem>>
    %c25 = arith.constant 25 : index
    %c0_77 = arith.constant 0 : index
    %232 = vector.load %arg2[%c25, %c0_77] : memref<64x4xf32, #tpu.memory_space<vmem>>, vector<1x4xf32>
    %233 = arith.index_cast %231 : i32 to index
    %c0_78 = arith.constant 0 : index
    %234 = vector.load %arg3[%233, %c0_78] : memref<24x4xf32, #tpu.memory_space<vmem>>, vector<1x4xf32>
    %235 = arith.addf %234, %232 : vector<1x4xf32>
    %236 = arith.index_cast %231 : i32 to index
    %c0_79 = arith.constant 0 : index
    %237 = vector.load %arg3[%236, %c0_79] : memref<24x4xf32, #tpu.memory_space<vmem>>, vector<1x4xf32>
    tpu.vector_store %arg3[%236, %c0_79], %235 {strides = array<i32>} : memref<24x4xf32, #tpu.memory_space<vmem>>, vector<1x4xf32>,
    %c26_i32 = arith.constant 26 : i32
    %238 = arith.addi %3, %c26_i32 : i32
    %239 = arith.index_cast %238 : i32 to index
    %240 = memref.load %arg1[%239] : memref<64xi32, #tpu.memory_space<smem>>
    %c26 = arith.constant 26 : index
    %c0_80 = arith.constant 0 : index
    %241 = vector.load %arg2[%c26, %c0_80] : memref<64x4xf32, #tpu.memory_space<vmem>>, vector<1x4xf32>
    %242 = arith.index_cast %240 : i32 to index
    %c0_81 = arith.constant 0 : index
    %243 = vector.load %arg3[%242, %c0_81] : memref<24x4xf32, #tpu.memory_space<vmem>>, vector<1x4xf32>
    %244 = arith.addf %243, %241 : vector<1x4xf32>
    %245 = arith.index_cast %240 : i32 to index
    %c0_82 = arith.constant 0 : index
    %246 = vector.load %arg3[%245, %c0_82] : memref<24x4xf32, #tpu.memory_space<vmem>>, vector<1x4xf32>
    tpu.vector_store %arg3[%245, %c0_82], %244 {strides = array<i32>} : memref<24x4xf32, #tpu.memory_space<vmem>>, vector<1x4xf32>,
    %c27_i32 = arith.constant 27 : i32
    %247 = arith.addi %3, %c27_i32 : i32
    %248 = arith.index_cast %247 : i32 to index
    %249 = memref.load %arg1[%248] : memref<64xi32, #tpu.memory_space<smem>>
    %c27 = arith.constant 27 : index
    %c0_83 = arith.constant 0 : index
    %250 = vector.load %arg2[%c27, %c0_83] : memref<64x4xf32, #tpu.memory_space<vmem>>, vector<1x4xf32>
    %251 = arith.index_cast %249 : i32 to index
    %c0_84 = arith.constant 0 : index
    %252 = vector.load %arg3[%251, %c0_84] : memref<24x4xf32, #tpu.memory_space<vmem>>, vector<1x4xf32>
    %253 = arith.addf %252, %250 : vector<1x4xf32>
    %254 = arith.index_cast %249 : i32 to index
    %c0_85 = arith.constant 0 : index
    %255 = vector.load %arg3[%254, %c0_85] : memref<24x4xf32, #tpu.memory_space<vmem>>, vector<1x4xf32>
    tpu.vector_store %arg3[%254, %c0_85], %253 {strides = array<i32>} : memref<24x4xf32, #tpu.memory_space<vmem>>, vector<1x4xf32>,
    %c28_i32 = arith.constant 28 : i32
    %256 = arith.addi %3, %c28_i32 : i32
    %257 = arith.index_cast %256 : i32 to index
    %258 = memref.load %arg1[%257] : memref<64xi32, #tpu.memory_space<smem>>
    %c28 = arith.constant 28 : index
    %c0_86 = arith.constant 0 : index
    %259 = vector.load %arg2[%c28, %c0_86] : memref<64x4xf32, #tpu.memory_space<vmem>>, vector<1x4xf32>
    %260 = arith.index_cast %258 : i32 to index
    %c0_87 = arith.constant 0 : index
    %261 = vector.load %arg3[%260, %c0_87] : memref<24x4xf32, #tpu.memory_space<vmem>>, vector<1x4xf32>
    %262 = arith.addf %261, %259 : vector<1x4xf32>
    %263 = arith.index_cast %258 : i32 to index
    %c0_88 = arith.constant 0 : index
    %264 = vector.load %arg3[%263, %c0_88] : memref<24x4xf32, #tpu.memory_space<vmem>>, vector<1x4xf32>
    tpu.vector_store %arg3[%263, %c0_88], %262 {strides = array<i32>} : memref<24x4xf32, #tpu.memory_space<vmem>>, vector<1x4xf32>,
    %c29_i32 = arith.constant 29 : i32
    %265 = arith.addi %3, %c29_i32 : i32
    %266 = arith.index_cast %265 : i32 to index
    %267 = memref.load %arg1[%266] : memref<64xi32, #tpu.memory_space<smem>>
    %c29 = arith.constant 29 : index
    %c0_89 = arith.constant 0 : index
    %268 = vector.load %arg2[%c29, %c0_89] : memref<64x4xf32, #tpu.memory_space<vmem>>, vector<1x4xf32>
    %269 = arith.index_cast %267 : i32 to index
    %c0_90 = arith.constant 0 : index
    %270 = vector.load %arg3[%269, %c0_90] : memref<24x4xf32, #tpu.memory_space<vmem>>, vector<1x4xf32>
    %271 = arith.addf %270, %268 : vector<1x4xf32>
    %272 = arith.index_cast %267 : i32 to index
    %c0_91 = arith.constant 0 : index
    %273 = vector.load %arg3[%272, %c0_91] : memref<24x4xf32, #tpu.memory_space<vmem>>, vector<1x4xf32>
    tpu.vector_store %arg3[%272, %c0_91], %271 {strides = array<i32>} : memref<24x4xf32, #tpu.memory_space<vmem>>, vector<1x4xf32>,
    %c30_i32 = arith.constant 30 : i32
    %274 = arith.addi %3, %c30_i32 : i32
    %275 = arith.index_cast %274 : i32 to index
    %276 = memref.load %arg1[%275] : memref<64xi32, #tpu.memory_space<smem>>
    %c30 = arith.constant 30 : index
    %c0_92 = arith.constant 0 : index
    %277 = vector.load %arg2[%c30, %c0_92] : memref<64x4xf32, #tpu.memory_space<vmem>>, vector<1x4xf32>
    %278 = arith.index_cast %276 : i32 to index
    %c0_93 = arith.constant 0 : index
    %279 = vector.load %arg3[%278, %c0_93] : memref<24x4xf32, #tpu.memory_space<vmem>>, vector<1x4xf32>
    %280 = arith.addf %279, %277 : vector<1x4xf32>
    %281 = arith.index_cast %276 : i32 to index
    %c0_94 = arith.constant 0 : index
    %282 = vector.load %arg3[%281, %c0_94] : memref<24x4xf32, #tpu.memory_space<vmem>>, vector<1x4xf32>
    tpu.vector_store %arg3[%281, %c0_94], %280 {strides = array<i32>} : memref<24x4xf32, #tpu.memory_space<vmem>>, vector<1x4xf32>,
    %c31_i32 = arith.constant 31 : i32
    %283 = arith.addi %3, %c31_i32 : i32
    %284 = arith.index_cast %283 : i32 to index
    %285 = memref.load %arg1[%284] : memref<64xi32, #tpu.memory_space<smem>>
    %c31 = arith.constant 31 : index
    %c0_95 = arith.constant 0 : index
    %286 = vector.load %arg2[%c31, %c0_95] : memref<64x4xf32, #tpu.memory_space<vmem>>, vector<1x4xf32>
    %287 = arith.index_cast %285 : i32 to index
    %c0_96 = arith.constant 0 : index
    %288 = vector.load %arg3[%287, %c0_96] : memref<24x4xf32, #tpu.memory_space<vmem>>, vector<1x4xf32>
    %289 = arith.addf %288, %286 : vector<1x4xf32>
    %290 = arith.index_cast %285 : i32 to index
    %c0_97 = arith.constant 0 : index
    %291 = vector.load %arg3[%290, %c0_97] : memref<24x4xf32, #tpu.memory_space<vmem>>, vector<1x4xf32>
    tpu.vector_store %arg3[%290, %c0_97], %289 {strides = array<i32>} : memref<24x4xf32, #tpu.memory_space<vmem>>, vector<1x4xf32>,
    %c32_i32 = arith.constant 32 : i32
    %292 = arith.addi %3, %c32_i32 : i32
    %293 = arith.index_cast %292 : i32 to index
    %294 = memref.load %arg1[%293] : memref<64xi32, #tpu.memory_space<smem>>
    %c32 = arith.constant 32 : index
    %c0_98 = arith.constant 0 : index
    %295 = vector.load %arg2[%c32, %c0_98] : memref<64x4xf32, #tpu.memory_space<vmem>>, vector<1x4xf32>
    %296 = arith.index_cast %294 : i32 to index
    %c0_99 = arith.constant 0 : index
    %297 = vector.load %arg3[%296, %c0_99] : memref<24x4xf32, #tpu.memory_space<vmem>>, vector<1x4xf32>
    %298 = arith.addf %297, %295 : vector<1x4xf32>
    %299 = arith.index_cast %294 : i32 to index
    %c0_100 = arith.constant 0 : index
    %300 = vector.load %arg3[%299, %c0_100] : memref<24x4xf32, #tpu.memory_space<vmem>>, vector<1x4xf32>
    tpu.vector_store %arg3[%299, %c0_100], %298 {strides = array<i32>} : memref<24x4xf32, #tpu.memory_space<vmem>>, vector<1x4xf32>,
    %c33_i32 = arith.constant 33 : i32
    %301 = arith.addi %3, %c33_i32 : i32
    %302 = arith.index_cast %301 : i32 to index
    %303 = memref.load %arg1[%302] : memref<64xi32, #tpu.memory_space<smem>>
    %c33 = arith.constant 33 : index
    %c0_101 = arith.constant 0 : index
    %304 = vector.load %arg2[%c33, %c0_101] : memref<64x4xf32, #tpu.memory_space<vmem>>, vector<1x4xf32>
    %305 = arith.index_cast %303 : i32 to index
    %c0_102 = arith.constant 0 : index
    %306 = vector.load %arg3[%305, %c0_102] : memref<24x4xf32, #tpu.memory_space<vmem>>, vector<1x4xf32>
    %307 = arith.addf %306, %304 : vector<1x4xf32>
    %308 = arith.index_cast %303 : i32 to index
    %c0_103 = arith.constant 0 : index
    %309 = vector.load %arg3[%308, %c0_103] : memref<24x4xf32, #tpu.memory_space<vmem>>, vector<1x4xf32>
    tpu.vector_store %arg3[%308, %c0_103], %307 {strides = array<i32>} : memref<24x4xf32, #tpu.memory_space<vmem>>, vector<1x4xf32>,
    %c34_i32 = arith.constant 34 : i32
    %310 = arith.addi %3, %c34_i32 : i32
    %311 = arith.index_cast %310 : i32 to index
    %312 = memref.load %arg1[%311] : memref<64xi32, #tpu.memory_space<smem>>
    %c34 = arith.constant 34 : index
    %c0_104 = arith.constant 0 : index
    %313 = vector.load %arg2[%c34, %c0_104] : memref<64x4xf32, #tpu.memory_space<vmem>>, vector<1x4xf32>
    %314 = arith.index_cast %312 : i32 to index
    %c0_105 = arith.constant 0 : index
    %315 = vector.load %arg3[%314, %c0_105] : memref<24x4xf32, #tpu.memory_space<vmem>>, vector<1x4xf32>
    %316 = arith.addf %315, %313 : vector<1x4xf32>
    %317 = arith.index_cast %312 : i32 to index
    %c0_106 = arith.constant 0 : index
    %318 = vector.load %arg3[%317, %c0_106] : memref<24x4xf32, #tpu.memory_space<vmem>>, vector<1x4xf32>
    tpu.vector_store %arg3[%317, %c0_106], %316 {strides = array<i32>} : memref<24x4xf32, #tpu.memory_space<vmem>>, vector<1x4xf32>,
    %c35_i32 = arith.constant 35 : i32
    %319 = arith.addi %3, %c35_i32 : i32
    %320 = arith.index_cast %319 : i32 to index
    %321 = memref.load %arg1[%320] : memref<64xi32, #tpu.memory_space<smem>>
    %c35 = arith.constant 35 : index
    %c0_107 = arith.constant 0 : index
    %322 = vector.load %arg2[%c35, %c0_107] : memref<64x4xf32, #tpu.memory_space<vmem>>, vector<1x4xf32>
    %323 = arith.index_cast %321 : i32 to index
    %c0_108 = arith.constant 0 : index
    %324 = vector.load %arg3[%323, %c0_108] : memref<24x4xf32, #tpu.memory_space<vmem>>, vector<1x4xf32>
    %325 = arith.addf %324, %322 : vector<1x4xf32>
    %326 = arith.index_cast %321 : i32 to index
    %c0_109 = arith.constant 0 : index
    %327 = vector.load %arg3[%326, %c0_109] : memref<24x4xf32, #tpu.memory_space<vmem>>, vector<1x4xf32>
    tpu.vector_store %arg3[%326, %c0_109], %325 {strides = array<i32>} : memref<24x4xf32, #tpu.memory_space<vmem>>, vector<1x4xf32>,
    %c36_i32 = arith.constant 36 : i32
    %328 = arith.addi %3, %c36_i32 : i32
    %329 = arith.index_cast %328 : i32 to index
    %330 = memref.load %arg1[%329] : memref<64xi32, #tpu.memory_space<smem>>
    %c36 = arith.constant 36 : index
    %c0_110 = arith.constant 0 : index
    %331 = vector.load %arg2[%c36, %c0_110] : memref<64x4xf32, #tpu.memory_space<vmem>>, vector<1x4xf32>
    %332 = arith.index_cast %330 : i32 to index
    %c0_111 = arith.constant 0 : index
    %333 = vector.load %arg3[%332, %c0_111] : memref<24x4xf32, #tpu.memory_space<vmem>>, vector<1x4xf32>
    %334 = arith.addf %333, %331 : vector<1x4xf32>
    %335 = arith.index_cast %330 : i32 to index
    %c0_112 = arith.constant 0 : index
    %336 = vector.load %arg3[%335, %c0_112] : memref<24x4xf32, #tpu.memory_space<vmem>>, vector<1x4xf32>
    tpu.vector_store %arg3[%335, %c0_112], %334 {strides = array<i32>} : memref<24x4xf32, #tpu.memory_space<vmem>>, vector<1x4xf32>,
    %c37_i32 = arith.constant 37 : i32
    %337 = arith.addi %3, %c37_i32 : i32
    %338 = arith.index_cast %337 : i32 to index
    %339 = memref.load %arg1[%338] : memref<64xi32, #tpu.memory_space<smem>>
    %c37 = arith.constant 37 : index
    %c0_113 = arith.constant 0 : index
    %340 = vector.load %arg2[%c37, %c0_113] : memref<64x4xf32, #tpu.memory_space<vmem>>, vector<1x4xf32>
    %341 = arith.index_cast %339 : i32 to index
    %c0_114 = arith.constant 0 : index
    %342 = vector.load %arg3[%341, %c0_114] : memref<24x4xf32, #tpu.memory_space<vmem>>, vector<1x4xf32>
    %343 = arith.addf %342, %340 : vector<1x4xf32>
    %344 = arith.index_cast %339 : i32 to index
    %c0_115 = arith.constant 0 : index
    %345 = vector.load %arg3[%344, %c0_115] : memref<24x4xf32, #tpu.memory_space<vmem>>, vector<1x4xf32>
    tpu.vector_store %arg3[%344, %c0_115], %343 {strides = array<i32>} : memref<24x4xf32, #tpu.memory_space<vmem>>, vector<1x4xf32>,
    %c38_i32 = arith.constant 38 : i32
    %346 = arith.addi %3, %c38_i32 : i32
    %347 = arith.index_cast %346 : i32 to index
    %348 = memref.load %arg1[%347] : memref<64xi32, #tpu.memory_space<smem>>
    %c38 = arith.constant 38 : index
    %c0_116 = arith.constant 0 : index
    %349 = vector.load %arg2[%c38, %c0_116] : memref<64x4xf32, #tpu.memory_space<vmem>>, vector<1x4xf32>
    %350 = arith.index_cast %348 : i32 to index
    %c0_117 = arith.constant 0 : index
    %351 = vector.load %arg3[%350, %c0_117] : memref<24x4xf32, #tpu.memory_space<vmem>>, vector<1x4xf32>
    %352 = arith.addf %351, %349 : vector<1x4xf32>
    %353 = arith.index_cast %348 : i32 to index
    %c0_118 = arith.constant 0 : index
    %354 = vector.load %arg3[%353, %c0_118] : memref<24x4xf32, #tpu.memory_space<vmem>>, vector<1x4xf32>
    tpu.vector_store %arg3[%353, %c0_118], %352 {strides = array<i32>} : memref<24x4xf32, #tpu.memory_space<vmem>>, vector<1x4xf32>,
    %c39_i32 = arith.constant 39 : i32
    %355 = arith.addi %3, %c39_i32 : i32
    %356 = arith.index_cast %355 : i32 to index
    %357 = memref.load %arg1[%356] : memref<64xi32, #tpu.memory_space<smem>>
    %c39 = arith.constant 39 : index
    %c0_119 = arith.constant 0 : index
    %358 = vector.load %arg2[%c39, %c0_119] : memref<64x4xf32, #tpu.memory_space<vmem>>, vector<1x4xf32>
    %359 = arith.index_cast %357 : i32 to index
    %c0_120 = arith.constant 0 : index
    %360 = vector.load %arg3[%359, %c0_120] : memref<24x4xf32, #tpu.memory_space<vmem>>, vector<1x4xf32>
    %361 = arith.addf %360, %358 : vector<1x4xf32>
    %362 = arith.index_cast %357 : i32 to index
    %c0_121 = arith.constant 0 : index
    %363 = vector.load %arg3[%362, %c0_121] : memref<24x4xf32, #tpu.memory_space<vmem>>, vector<1x4xf32>
    tpu.vector_store %arg3[%362, %c0_121], %361 {strides = array<i32>} : memref<24x4xf32, #tpu.memory_space<vmem>>, vector<1x4xf32>,
    %c40_i32 = arith.constant 40 : i32
    %364 = arith.addi %3, %c40_i32 : i32
    %365 = arith.index_cast %364 : i32 to index
    %366 = memref.load %arg1[%365] : memref<64xi32, #tpu.memory_space<smem>>
    %c40 = arith.constant 40 : index
    %c0_122 = arith.constant 0 : index
    %367 = vector.load %arg2[%c40, %c0_122] : memref<64x4xf32, #tpu.memory_space<vmem>>, vector<1x4xf32>
    %368 = arith.index_cast %366 : i32 to index
    %c0_123 = arith.constant 0 : index
    %369 = vector.load %arg3[%368, %c0_123] : memref<24x4xf32, #tpu.memory_space<vmem>>, vector<1x4xf32>
    %370 = arith.addf %369, %367 : vector<1x4xf32>
    %371 = arith.index_cast %366 : i32 to index
    %c0_124 = arith.constant 0 : index
    %372 = vector.load %arg3[%371, %c0_124] : memref<24x4xf32, #tpu.memory_space<vmem>>, vector<1x4xf32>
    tpu.vector_store %arg3[%371, %c0_124], %370 {strides = array<i32>} : memref<24x4xf32, #tpu.memory_space<vmem>>, vector<1x4xf32>,
    %c41_i32 = arith.constant 41 : i32
    %373 = arith.addi %3, %c41_i32 : i32
    %374 = arith.index_cast %373 : i32 to index
    %375 = memref.load %arg1[%374] : memref<64xi32, #tpu.memory_space<smem>>
    %c41 = arith.constant 41 : index
    %c0_125 = arith.constant 0 : index
    %376 = vector.load %arg2[%c41, %c0_125] : memref<64x4xf32, #tpu.memory_space<vmem>>, vector<1x4xf32>
    %377 = arith.index_cast %375 : i32 to index
    %c0_126 = arith.constant 0 : index
    %378 = vector.load %arg3[%377, %c0_126] : memref<24x4xf32, #tpu.memory_space<vmem>>, vector<1x4xf32>
    %379 = arith.addf %378, %376 : vector<1x4xf32>
    %380 = arith.index_cast %375 : i32 to index
    %c0_127 = arith.constant 0 : index
    %381 = vector.load %arg3[%380, %c0_127] : memref<24x4xf32, #tpu.memory_space<vmem>>, vector<1x4xf32>
    tpu.vector_store %arg3[%380, %c0_127], %379 {strides = array<i32>} : memref<24x4xf32, #tpu.memory_space<vmem>>, vector<1x4xf32>,
    %c42_i32 = arith.constant 42 : i32
    %382 = arith.addi %3, %c42_i32 : i32
    %383 = arith.index_cast %382 : i32 to index
    %384 = memref.load %arg1[%383] : memref<64xi32, #tpu.memory_space<smem>>
    %c42 = arith.constant 42 : index
    %c0_128 = arith.constant 0 : index
    %385 = vector.load %arg2[%c42, %c0_128] : memref<64x4xf32, #tpu.memory_space<vmem>>, vector<1x4xf32>
    %386 = arith.index_cast %384 : i32 to index
    %c0_129 = arith.constant 0 : index
    %387 = vector.load %arg3[%386, %c0_129] : memref<24x4xf32, #tpu.memory_space<vmem>>, vector<1x4xf32>
    %388 = arith.addf %387, %385 : vector<1x4xf32>
    %389 = arith.index_cast %384 : i32 to index
    %c0_130 = arith.constant 0 : index
    %390 = vector.load %arg3[%389, %c0_130] : memref<24x4xf32, #tpu.memory_space<vmem>>, vector<1x4xf32>
    tpu.vector_store %arg3[%389, %c0_130], %388 {strides = array<i32>} : memref<24x4xf32, #tpu.memory_space<vmem>>, vector<1x4xf32>,
    %c43_i32 = arith.constant 43 : i32
    %391 = arith.addi %3, %c43_i32 : i32
    %392 = arith.index_cast %391 : i32 to index
    %393 = memref.load %arg1[%392] : memref<64xi32, #tpu.memory_space<smem>>
    %c43 = arith.constant 43 : index
    %c0_131 = arith.constant 0 : index
    %394 = vector.load %arg2[%c43, %c0_131] : memref<64x4xf32, #tpu.memory_space<vmem>>, vector<1x4xf32>
    %395 = arith.index_cast %393 : i32 to index
    %c0_132 = arith.constant 0 : index
    %396 = vector.load %arg3[%395, %c0_132] : memref<24x4xf32, #tpu.memory_space<vmem>>, vector<1x4xf32>
    %397 = arith.addf %396, %394 : vector<1x4xf32>
    %398 = arith.index_cast %393 : i32 to index
    %c0_133 = arith.constant 0 : index
    %399 = vector.load %arg3[%398, %c0_133] : memref<24x4xf32, #tpu.memory_space<vmem>>, vector<1x4xf32>
    tpu.vector_store %arg3[%398, %c0_133], %397 {strides = array<i32>} : memref<24x4xf32, #tpu.memory_space<vmem>>, vector<1x4xf32>,
    %c44_i32 = arith.constant 44 : i32
    %400 = arith.addi %3, %c44_i32 : i32
    %401 = arith.index_cast %400 : i32 to index
    %402 = memref.load %arg1[%401] : memref<64xi32, #tpu.memory_space<smem>>
    %c44 = arith.constant 44 : index
    %c0_134 = arith.constant 0 : index
    %403 = vector.load %arg2[%c44, %c0_134] : memref<64x4xf32, #tpu.memory_space<vmem>>, vector<1x4xf32>
    %404 = arith.index_cast %402 : i32 to index
    %c0_135 = arith.constant 0 : index
    %405 = vector.load %arg3[%404, %c0_135] : memref<24x4xf32, #tpu.memory_space<vmem>>, vector<1x4xf32>
    %406 = arith.addf %405, %403 : vector<1x4xf32>
    %407 = arith.index_cast %402 : i32 to index
    %c0_136 = arith.constant 0 : index
    %408 = vector.load %arg3[%407, %c0_136] : memref<24x4xf32, #tpu.memory_space<vmem>>, vector<1x4xf32>
    tpu.vector_store %arg3[%407, %c0_136], %406 {strides = array<i32>} : memref<24x4xf32, #tpu.memory_space<vmem>>, vector<1x4xf32>,
    %c45_i32 = arith.constant 45 : i32
    %409 = arith.addi %3, %c45_i32 : i32
    %410 = arith.index_cast %409 : i32 to index
    %411 = memref.load %arg1[%410] : memref<64xi32, #tpu.memory_space<smem>>
    %c45 = arith.constant 45 : index
    %c0_137 = arith.constant 0 : index
    %412 = vector.load %arg2[%c45, %c0_137] : memref<64x4xf32, #tpu.memory_space<vmem>>, vector<1x4xf32>
    %413 = arith.index_cast %411 : i32 to index
    %c0_138 = arith.constant 0 : index
    %414 = vector.load %arg3[%413, %c0_138] : memref<24x4xf32, #tpu.memory_space<vmem>>, vector<1x4xf32>
    %415 = arith.addf %414, %412 : vector<1x4xf32>
    %416 = arith.index_cast %411 : i32 to index
    %c0_139 = arith.constant 0 : index
    %417 = vector.load %arg3[%416, %c0_139] : memref<24x4xf32, #tpu.memory_space<vmem>>, vector<1x4xf32>
    tpu.vector_store %arg3[%416, %c0_139], %415 {strides = array<i32>} : memref<24x4xf32, #tpu.memory_space<vmem>>, vector<1x4xf32>,
    %c46_i32 = arith.constant 46 : i32
    %418 = arith.addi %3, %c46_i32 : i32
    %419 = arith.index_cast %418 : i32 to index
    %420 = memref.load %arg1[%419] : memref<64xi32, #tpu.memory_space<smem>>
    %c46 = arith.constant 46 : index
    %c0_140 = arith.constant 0 : index
    %421 = vector.load %arg2[%c46, %c0_140] : memref<64x4xf32, #tpu.memory_space<vmem>>, vector<1x4xf32>
    %422 = arith.index_cast %420 : i32 to index
    %c0_141 = arith.constant 0 : index
    %423 = vector.load %arg3[%422, %c0_141] : memref<24x4xf32, #tpu.memory_space<vmem>>, vector<1x4xf32>
    %424 = arith.addf %423, %421 : vector<1x4xf32>
    %425 = arith.index_cast %420 : i32 to index
    %c0_142 = arith.constant 0 : index
    %426 = vector.load %arg3[%425, %c0_142] : memref<24x4xf32, #tpu.memory_space<vmem>>, vector<1x4xf32>
    tpu.vector_store %arg3[%425, %c0_142], %424 {strides = array<i32>} : memref<24x4xf32, #tpu.memory_space<vmem>>, vector<1x4xf32>,
    %c47_i32 = arith.constant 47 : i32
    %427 = arith.addi %3, %c47_i32 : i32
    %428 = arith.index_cast %427 : i32 to index
    %429 = memref.load %arg1[%428] : memref<64xi32, #tpu.memory_space<smem>>
    %c47 = arith.constant 47 : index
    %c0_143 = arith.constant 0 : index
    %430 = vector.load %arg2[%c47, %c0_143] : memref<64x4xf32, #tpu.memory_space<vmem>>, vector<1x4xf32>
    %431 = arith.index_cast %429 : i32 to index
    %c0_144 = arith.constant 0 : index
    %432 = vector.load %arg3[%431, %c0_144] : memref<24x4xf32, #tpu.memory_space<vmem>>, vector<1x4xf32>
    %433 = arith.addf %432, %430 : vector<1x4xf32>
    %434 = arith.index_cast %429 : i32 to index
    %c0_145 = arith.constant 0 : index
    %435 = vector.load %arg3[%434, %c0_145] : memref<24x4xf32, #tpu.memory_space<vmem>>, vector<1x4xf32>
    tpu.vector_store %arg3[%434, %c0_145], %433 {strides = array<i32>} : memref<24x4xf32, #tpu.memory_space<vmem>>, vector<1x4xf32>,
    %c48_i32 = arith.constant 48 : i32
    %436 = arith.addi %3, %c48_i32 : i32
    %437 = arith.index_cast %436 : i32 to index
    %438 = memref.load %arg1[%437] : memref<64xi32, #tpu.memory_space<smem>>
    %c48 = arith.constant 48 : index
    %c0_146 = arith.constant 0 : index
    %439 = vector.load %arg2[%c48, %c0_146] : memref<64x4xf32, #tpu.memory_space<vmem>>, vector<1x4xf32>
    %440 = arith.index_cast %438 : i32 to index
    %c0_147 = arith.constant 0 : index
    %441 = vector.load %arg3[%440, %c0_147] : memref<24x4xf32, #tpu.memory_space<vmem>>, vector<1x4xf32>
    %442 = arith.addf %441, %439 : vector<1x4xf32>
    %443 = arith.index_cast %438 : i32 to index
    %c0_148 = arith.constant 0 : index
    %444 = vector.load %arg3[%443, %c0_148] : memref<24x4xf32, #tpu.memory_space<vmem>>, vector<1x4xf32>
    tpu.vector_store %arg3[%443, %c0_148], %442 {strides = array<i32>} : memref<24x4xf32, #tpu.memory_space<vmem>>, vector<1x4xf32>,
    %c49_i32 = arith.constant 49 : i32
    %445 = arith.addi %3, %c49_i32 : i32
    %446 = arith.index_cast %445 : i32 to index
    %447 = memref.load %arg1[%446] : memref<64xi32, #tpu.memory_space<smem>>
    %c49 = arith.constant 49 : index
    %c0_149 = arith.constant 0 : index
    %448 = vector.load %arg2[%c49, %c0_149] : memref<64x4xf32, #tpu.memory_space<vmem>>, vector<1x4xf32>
    %449 = arith.index_cast %447 : i32 to index
    %c0_150 = arith.constant 0 : index
    %450 = vector.load %arg3[%449, %c0_150] : memref<24x4xf32, #tpu.memory_space<vmem>>, vector<1x4xf32>
    %451 = arith.addf %450, %448 : vector<1x4xf32>
    %452 = arith.index_cast %447 : i32 to index
    %c0_151 = arith.constant 0 : index
    %453 = vector.load %arg3[%452, %c0_151] : memref<24x4xf32, #tpu.memory_space<vmem>>, vector<1x4xf32>
    tpu.vector_store %arg3[%452, %c0_151], %451 {strides = array<i32>} : memref<24x4xf32, #tpu.memory_space<vmem>>, vector<1x4xf32>,
    %c50_i32 = arith.constant 50 : i32
    %454 = arith.addi %3, %c50_i32 : i32
    %455 = arith.index_cast %454 : i32 to index
    %456 = memref.load %arg1[%455] : memref<64xi32, #tpu.memory_space<smem>>
    %c50 = arith.constant 50 : index
    %c0_152 = arith.constant 0 : index
    %457 = vector.load %arg2[%c50, %c0_152] : memref<64x4xf32, #tpu.memory_space<vmem>>, vector<1x4xf32>
    %458 = arith.index_cast %456 : i32 to index
    %c0_153 = arith.constant 0 : index
    %459 = vector.load %arg3[%458, %c0_153] : memref<24x4xf32, #tpu.memory_space<vmem>>, vector<1x4xf32>
    %460 = arith.addf %459, %457 : vector<1x4xf32>
    %461 = arith.index_cast %456 : i32 to index
    %c0_154 = arith.constant 0 : index
    %462 = vector.load %arg3[%461, %c0_154] : memref<24x4xf32, #tpu.memory_space<vmem>>, vector<1x4xf32>
    tpu.vector_store %arg3[%461, %c0_154], %460 {strides = array<i32>} : memref<24x4xf32, #tpu.memory_space<vmem>>, vector<1x4xf32>,
    %c51_i32 = arith.constant 51 : i32
    %463 = arith.addi %3, %c51_i32 : i32
    %464 = arith.index_cast %463 : i32 to index
    %465 = memref.load %arg1[%464] : memref<64xi32, #tpu.memory_space<smem>>
    %c51 = arith.constant 51 : index
    %c0_155 = arith.constant 0 : index
    %466 = vector.load %arg2[%c51, %c0_155] : memref<64x4xf32, #tpu.memory_space<vmem>>, vector<1x4xf32>
    %467 = arith.index_cast %465 : i32 to index
    %c0_156 = arith.constant 0 : index
    %468 = vector.load %arg3[%467, %c0_156] : memref<24x4xf32, #tpu.memory_space<vmem>>, vector<1x4xf32>
    %469 = arith.addf %468, %466 : vector<1x4xf32>
    %470 = arith.index_cast %465 : i32 to index
    %c0_157 = arith.constant 0 : index
    %471 = vector.load %arg3[%470, %c0_157] : memref<24x4xf32, #tpu.memory_space<vmem>>, vector<1x4xf32>
    tpu.vector_store %arg3[%470, %c0_157], %469 {strides = array<i32>} : memref<24x4xf32, #tpu.memory_space<vmem>>, vector<1x4xf32>,
    %c52_i32 = arith.constant 52 : i32
    %472 = arith.addi %3, %c52_i32 : i32
    %473 = arith.index_cast %472 : i32 to index
    %474 = memref.load %arg1[%473] : memref<64xi32, #tpu.memory_space<smem>>
    %c52 = arith.constant 52 : index
    %c0_158 = arith.constant 0 : index
    %475 = vector.load %arg2[%c52, %c0_158] : memref<64x4xf32, #tpu.memory_space<vmem>>, vector<1x4xf32>
    %476 = arith.index_cast %474 : i32 to index
    %c0_159 = arith.constant 0 : index
    %477 = vector.load %arg3[%476, %c0_159] : memref<24x4xf32, #tpu.memory_space<vmem>>, vector<1x4xf32>
    %478 = arith.addf %477, %475 : vector<1x4xf32>
    %479 = arith.index_cast %474 : i32 to index
    %c0_160 = arith.constant 0 : index
    %480 = vector.load %arg3[%479, %c0_160] : memref<24x4xf32, #tpu.memory_space<vmem>>, vector<1x4xf32>
    tpu.vector_store %arg3[%479, %c0_160], %478 {strides = array<i32>} : memref<24x4xf32, #tpu.memory_space<vmem>>, vector<1x4xf32>,
    %c53_i32 = arith.constant 53 : i32
    %481 = arith.addi %3, %c53_i32 : i32
    %482 = arith.index_cast %481 : i32 to index
    %483 = memref.load %arg1[%482] : memref<64xi32, #tpu.memory_space<smem>>
    %c53 = arith.constant 53 : index
    %c0_161 = arith.constant 0 : index
    %484 = vector.load %arg2[%c53, %c0_161] : memref<64x4xf32, #tpu.memory_space<vmem>>, vector<1x4xf32>
    %485 = arith.index_cast %483 : i32 to index
    %c0_162 = arith.constant 0 : index
    %486 = vector.load %arg3[%485, %c0_162] : memref<24x4xf32, #tpu.memory_space<vmem>>, vector<1x4xf32>
    %487 = arith.addf %486, %484 : vector<1x4xf32>
    %488 = arith.index_cast %483 : i32 to index
    %c0_163 = arith.constant 0 : index
    %489 = vector.load %arg3[%488, %c0_163] : memref<24x4xf32, #tpu.memory_space<vmem>>, vector<1x4xf32>
    tpu.vector_store %arg3[%488, %c0_163], %487 {strides = array<i32>} : memref<24x4xf32, #tpu.memory_space<vmem>>, vector<1x4xf32>,
    %c54_i32 = arith.constant 54 : i32
    %490 = arith.addi %3, %c54_i32 : i32
    %491 = arith.index_cast %490 : i32 to index
    %492 = memref.load %arg1[%491] : memref<64xi32, #tpu.memory_space<smem>>
    %c54 = arith.constant 54 : index
    %c0_164 = arith.constant 0 : index
    %493 = vector.load %arg2[%c54, %c0_164] : memref<64x4xf32, #tpu.memory_space<vmem>>, vector<1x4xf32>
    %494 = arith.index_cast %492 : i32 to index
    %c0_165 = arith.constant 0 : index
    %495 = vector.load %arg3[%494, %c0_165] : memref<24x4xf32, #tpu.memory_space<vmem>>, vector<1x4xf32>
    %496 = arith.addf %495, %493 : vector<1x4xf32>
    %497 = arith.index_cast %492 : i32 to index
    %c0_166 = arith.constant 0 : index
    %498 = vector.load %arg3[%497, %c0_166] : memref<24x4xf32, #tpu.memory_space<vmem>>, vector<1x4xf32>
    tpu.vector_store %arg3[%497, %c0_166], %496 {strides = array<i32>} : memref<24x4xf32, #tpu.memory_space<vmem>>, vector<1x4xf32>,
    %c55_i32 = arith.constant 55 : i32
    %499 = arith.addi %3, %c55_i32 : i32
    %500 = arith.index_cast %499 : i32 to index
    %501 = memref.load %arg1[%500] : memref<64xi32, #tpu.memory_space<smem>>
    %c55 = arith.constant 55 : index
    %c0_167 = arith.constant 0 : index
    %502 = vector.load %arg2[%c55, %c0_167] : memref<64x4xf32, #tpu.memory_space<vmem>>, vector<1x4xf32>
    %503 = arith.index_cast %501 : i32 to index
    %c0_168 = arith.constant 0 : index
    %504 = vector.load %arg3[%503, %c0_168] : memref<24x4xf32, #tpu.memory_space<vmem>>, vector<1x4xf32>
    %505 = arith.addf %504, %502 : vector<1x4xf32>
    %506 = arith.index_cast %501 : i32 to index
    %c0_169 = arith.constant 0 : index
    %507 = vector.load %arg3[%506, %c0_169] : memref<24x4xf32, #tpu.memory_space<vmem>>, vector<1x4xf32>
    tpu.vector_store %arg3[%506, %c0_169], %505 {strides = array<i32>} : memref<24x4xf32, #tpu.memory_space<vmem>>, vector<1x4xf32>,
    %c56_i32 = arith.constant 56 : i32
    %508 = arith.addi %3, %c56_i32 : i32
    %509 = arith.index_cast %508 : i32 to index
    %510 = memref.load %arg1[%509] : memref<64xi32, #tpu.memory_space<smem>>
    %c56 = arith.constant 56 : index
    %c0_170 = arith.constant 0 : index
    %511 = vector.load %arg2[%c56, %c0_170] : memref<64x4xf32, #tpu.memory_space<vmem>>, vector<1x4xf32>
    %512 = arith.index_cast %510 : i32 to index
    %c0_171 = arith.constant 0 : index
    %513 = vector.load %arg3[%512, %c0_171] : memref<24x4xf32, #tpu.memory_space<vmem>>, vector<1x4xf32>
    %514 = arith.addf %513, %511 : vector<1x4xf32>
    %515 = arith.index_cast %510 : i32 to index
    %c0_172 = arith.constant 0 : index
    %516 = vector.load %arg3[%515, %c0_172] : memref<24x4xf32, #tpu.memory_space<vmem>>, vector<1x4xf32>
    tpu.vector_store %arg3[%515, %c0_172], %514 {strides = array<i32>} : memref<24x4xf32, #tpu.memory_space<vmem>>, vector<1x4xf32>,
    %c57_i32 = arith.constant 57 : i32
    %517 = arith.addi %3, %c57_i32 : i32
    %518 = arith.index_cast %517 : i32 to index
    %519 = memref.load %arg1[%518] : memref<64xi32, #tpu.memory_space<smem>>
    %c57 = arith.constant 57 : index
    %c0_173 = arith.constant 0 : index
    %520 = vector.load %arg2[%c57, %c0_173] : memref<64x4xf32, #tpu.memory_space<vmem>>, vector<1x4xf32>
    %521 = arith.index_cast %519 : i32 to index
    %c0_174 = arith.constant 0 : index
    %522 = vector.load %arg3[%521, %c0_174] : memref<24x4xf32, #tpu.memory_space<vmem>>, vector<1x4xf32>
    %523 = arith.addf %522, %520 : vector<1x4xf32>
    %524 = arith.index_cast %519 : i32 to index
    %c0_175 = arith.constant 0 : index
    %525 = vector.load %arg3[%524, %c0_175] : memref<24x4xf32, #tpu.memory_space<vmem>>, vector<1x4xf32>
    tpu.vector_store %arg3[%524, %c0_175], %523 {strides = array<i32>} : memref<24x4xf32, #tpu.memory_space<vmem>>, vector<1x4xf32>,
    %c58_i32 = arith.constant 58 : i32
    %526 = arith.addi %3, %c58_i32 : i32
    %527 = arith.index_cast %526 : i32 to index
    %528 = memref.load %arg1[%527] : memref<64xi32, #tpu.memory_space<smem>>
    %c58 = arith.constant 58 : index
    %c0_176 = arith.constant 0 : index
    %529 = vector.load %arg2[%c58, %c0_176] : memref<64x4xf32, #tpu.memory_space<vmem>>, vector<1x4xf32>
    %530 = arith.index_cast %528 : i32 to index
    %c0_177 = arith.constant 0 : index
    %531 = vector.load %arg3[%530, %c0_177] : memref<24x4xf32, #tpu.memory_space<vmem>>, vector<1x4xf32>
    %532 = arith.addf %531, %529 : vector<1x4xf32>
    %533 = arith.index_cast %528 : i32 to index
    %c0_178 = arith.constant 0 : index
    %534 = vector.load %arg3[%533, %c0_178] : memref<24x4xf32, #tpu.memory_space<vmem>>, vector<1x4xf32>
    tpu.vector_store %arg3[%533, %c0_178], %532 {strides = array<i32>} : memref<24x4xf32, #tpu.memory_space<vmem>>, vector<1x4xf32>,
    %c59_i32 = arith.constant 59 : i32
    %535 = arith.addi %3, %c59_i32 : i32
    %536 = arith.index_cast %535 : i32 to index
    %537 = memref.load %arg1[%536] : memref<64xi32, #tpu.memory_space<smem>>
    %c59 = arith.constant 59 : index
    %c0_179 = arith.constant 0 : index
    %538 = vector.load %arg2[%c59, %c0_179] : memref<64x4xf32, #tpu.memory_space<vmem>>, vector<1x4xf32>
    %539 = arith.index_cast %537 : i32 to index
    %c0_180 = arith.constant 0 : index
    %540 = vector.load %arg3[%539, %c0_180] : memref<24x4xf32, #tpu.memory_space<vmem>>, vector<1x4xf32>
    %541 = arith.addf %540, %538 : vector<1x4xf32>
    %542 = arith.index_cast %537 : i32 to index
    %c0_181 = arith.constant 0 : index
    %543 = vector.load %arg3[%542, %c0_181] : memref<24x4xf32, #tpu.memory_space<vmem>>, vector<1x4xf32>
    tpu.vector_store %arg3[%542, %c0_181], %541 {strides = array<i32>} : memref<24x4xf32, #tpu.memory_space<vmem>>, vector<1x4xf32>,
    %c60_i32 = arith.constant 60 : i32
    %544 = arith.addi %3, %c60_i32 : i32
    %545 = arith.index_cast %544 : i32 to index
    %546 = memref.load %arg1[%545] : memref<64xi32, #tpu.memory_space<smem>>
    %c60 = arith.constant 60 : index
    %c0_182 = arith.constant 0 : index
    %547 = vector.load %arg2[%c60, %c0_182] : memref<64x4xf32, #tpu.memory_space<vmem>>, vector<1x4xf32>
    %548 = arith.index_cast %546 : i32 to index
    %c0_183 = arith.constant 0 : index
    %549 = vector.load %arg3[%548, %c0_183] : memref<24x4xf32, #tpu.memory_space<vmem>>, vector<1x4xf32>
    %550 = arith.addf %549, %547 : vector<1x4xf32>
    %551 = arith.index_cast %546 : i32 to index
    %c0_184 = arith.constant 0 : index
    %552 = vector.load %arg3[%551, %c0_184] : memref<24x4xf32, #tpu.memory_space<vmem>>, vector<1x4xf32>
    tpu.vector_store %arg3[%551, %c0_184], %550 {strides = array<i32>} : memref<24x4xf32, #tpu.memory_space<vmem>>, vector<1x4xf32>,
    %c61_i32 = arith.constant 61 : i32
    %553 = arith.addi %3, %c61_i32 : i32
    %554 = arith.index_cast %553 : i32 to index
    %555 = memref.load %arg1[%554] : memref<64xi32, #tpu.memory_space<smem>>
    %c61 = arith.constant 61 : index
    %c0_185 = arith.constant 0 : index
    %556 = vector.load %arg2[%c61, %c0_185] : memref<64x4xf32, #tpu.memory_space<vmem>>, vector<1x4xf32>
    %557 = arith.index_cast %555 : i32 to index
    %c0_186 = arith.constant 0 : index
    %558 = vector.load %arg3[%557, %c0_186] : memref<24x4xf32, #tpu.memory_space<vmem>>, vector<1x4xf32>
    %559 = arith.addf %558, %556 : vector<1x4xf32>
    %560 = arith.index_cast %555 : i32 to index
    %c0_187 = arith.constant 0 : index
    %561 = vector.load %arg3[%560, %c0_187] : memref<24x4xf32, #tpu.memory_space<vmem>>, vector<1x4xf32>
    tpu.vector_store %arg3[%560, %c0_187], %559 {strides = array<i32>} : memref<24x4xf32, #tpu.memory_space<vmem>>, vector<1x4xf32>,
    %c62_i32 = arith.constant 62 : i32
    %562 = arith.addi %3, %c62_i32 : i32
    %563 = arith.index_cast %562 : i32 to index
    %564 = memref.load %arg1[%563] : memref<64xi32, #tpu.memory_space<smem>>
    %c62 = arith.constant 62 : index
    %c0_188 = arith.constant 0 : index
    %565 = vector.load %arg2[%c62, %c0_188] : memref<64x4xf32, #tpu.memory_space<vmem>>, vector<1x4xf32>
    %566 = arith.index_cast %564 : i32 to index
    %c0_189 = arith.constant 0 : index
    %567 = vector.load %arg3[%566, %c0_189] : memref<24x4xf32, #tpu.memory_space<vmem>>, vector<1x4xf32>
    %568 = arith.addf %567, %565 : vector<1x4xf32>
    %569 = arith.index_cast %564 : i32 to index
    %c0_190 = arith.constant 0 : index
    %570 = vector.load %arg3[%569, %c0_190] : memref<24x4xf32, #tpu.memory_space<vmem>>, vector<1x4xf32>
    tpu.vector_store %arg3[%569, %c0_190], %568 {strides = array<i32>} : memref<24x4xf32, #tpu.memory_space<vmem>>, vector<1x4xf32>,
    %c63_i32 = arith.constant 63 : i32
    %571 = arith.addi %3, %c63_i32 : i32
    %572 = arith.index_cast %571 : i32 to index
    %573 = memref.load %arg1[%572] : memref<64xi32, #tpu.memory_space<smem>>
    %c63 = arith.constant 63 : index
    %c0_191 = arith.constant 0 : index
    %574 = vector.load %arg2[%c63, %c0_191] : memref<64x4xf32, #tpu.memory_space<vmem>>, vector<1x4xf32>
    %575 = arith.index_cast %573 : i32 to index
    %c0_192 = arith.constant 0 : index
    %576 = vector.load %arg3[%575, %c0_192] : memref<24x4xf32, #tpu.memory_space<vmem>>, vector<1x4xf32>
    %577 = arith.addf %576, %574 : vector<1x4xf32>
    %578 = arith.index_cast %573 : i32 to index
    %c0_193 = arith.constant 0 : index
    %579 = vector.load %arg3[%578, %c0_193] : memref<24x4xf32, #tpu.memory_space<vmem>>, vector<1x4xf32>
    tpu.vector_store %arg3[%578, %c0_193], %577 {strides = array<i32>} : memref<24x4xf32, #tpu.memory_space<vmem>>, vector<1x4xf32>,
    return
  }
  func.func @transform_0(%arg0: i32, %arg1: memref<64xi32, #tpu.memory_space<smem>>) -> (i32, i32) {
    %c0_i32 = arith.constant 0 : i32
    %c0_i32_0 = arith.constant 0 : i32
    return %arg0, %c0_i32 : i32, i32
  }
  func.func @transform_1(%arg0: i32, %arg1: memref<64xi32, #tpu.memory_space<smem>>) -> (i32, i32) {
    %c0_i32 = arith.constant 0 : i32
    %c0_i32_0 = arith.constant 0 : i32
    %c0_i32_1 = arith.constant 0 : i32
    return %c0_i32, %c0_i32_0 : i32, i32
  }
}

</mosaic_0001>

<bundles_post_ra>
// kernel: tpu_custom_call.1
= control target key start
LH: loop header
LB: loop body
LE: loop exit
PB: predicated region body
PF: predicated region fallthrough
CT: control target
= control target key end

     0   :  { %s1096_s0 = inlined_call_operand.vmem [shape: s32[64], index: 0, kind: input, shape index: {}]   ;;  %s1097_s1 = inlined_call_operand.vmem [shape: f32[64,4], index: 1, kind: input, shape index: {}]   ;;  %s1098_s2 = inlined_call_operand.vmem [shape: f32[24,4], index: 2, kind: output, shape index: {}]  }
   0x1   :  { %s7_s11 = sshll.u32 %s1096_s0, 4  ;;  %s8_s11 = int_to_ptr.vmem [resolvable:$true] %s7_s11 }
   0x2   :  { %s605_s12 = scalar_lea.vmem %s8_s11, 16  ;;  %p610_p1 = scmp.lt.s32.totalorder %s8_s11, %s8_s11 }
   0x3   :  { %p606_p0 = scmp.ne.s32.totalorder %s8_s11, %s605_s12  ;;  %p611_p2 = scmp.lt.s32.totalorder %s605_s12, %s605_s12 }
   0x5   :  { %p612_p3 = por %p611_p2, %p610_p1 }
   0x7   :  { %p613_p4 = pnand %p612_p3, %p606_p0 }
   0x9   :  { %616 = shalt.err (!%p613_p4)  }
   0xa   :  { %s619_s13 = smov [#allocation3]  }
   0xb   :  { %10 = dma.vmem_to_smem %s8_s11, 16, %s619_s13, [#allocation2] }
   0xc   :  { %617 = dma.done.wait [#allocation2], 16 }
   0xd   :  { %618 = vsyncadd [#allocation2], 4294967280 }
   0xe   :  { %12 = sfence }
   0xf   :  { %vm19_vm0 = vcmask 31744   ;;  %s24_s14 = sld [smem:[#allocation3]]  ;;  %v620_v0 = vmov 0.0   ;;  %v25_v1 = vld [vmem:[%s1097_s1] sm:$0x1]  ;;  %s540_s25 = sld [smem:[#allocation3 + $0x1]] }
  0x10   :  { %20 = vst.msk [vmem:[%s1098_s2] sm:$0xff] %vm19_vm0, %v620_v0  ;;  %21 = vst.msk [vmem:[%s1098_s2 + $0x8] sm:$0xff] %vm19_vm0, %v620_v0  ;;  %vm29_vm1 = vcmask 24576   ;;  %v33_v4 = vld [vmem:[%s1097_s1 + $0x1] sm:$0x1]  ;;  %s541_s3 = sld [smem:[#allocation3 + $0x2]] }
  0x11   :  { %22 = vst.msk [vmem:[%s1098_s2 + $0x10] sm:$0xff] %vm19_vm0, %v620_v0  ;;  %v40_v7 = vld [vmem:[%s1097_s1 + $0x2] sm:$0x1]  ;;  %s542_s9 = sld [smem:[#allocation3 + $0x3]]  ;;  %v47_v10 = vld [vmem:[%s1097_s1 + $0x3] sm:$0x1] }
  0x12   :  { %s543_s15 = sld [smem:[#allocation3 + $0x4]]  ;;  %v54_v13 = vld [vmem:[%s1097_s1 + $0x4] sm:$0x1]  ;;  %s544_s20 = sld [smem:[#allocation3 + $0x5]]  ;;  %v61_v16 = vld [vmem:[%s1097_s1 + $0x5] sm:$0x1] }
  0x13   :  { %s545_s26 = sld [smem:[#allocation3 + $0x6]]  ;;  %v68_v19 = vld [vmem:[%s1097_s1 + $0x6] sm:$0x1]  ;;  %s546_s4 = sld [smem:[#allocation3 + $0x7]]  ;;  %v75_v22 = vld [vmem:[%s1097_s1 + $0x7] sm:$0x1] }
  0x14   :  { %s547_s10 = sld [smem:[#allocation3 + $0x8]]  ;;  %v82_v25 = vld [vmem:[%s1097_s1 + $0x8] sm:$0x1]  ;;  %s548_s16 = sld [smem:[#allocation3 + $0x9]]  ;;  %v89_v28 = vld [vmem:[%s1097_s1 + $0x9] sm:$0x1] }
  0x15   :  { %s26_s24 = scalar_lea.vmem %s1098_s2, %s24_s14  ;;  %s34_s28 = scalar_lea.vmem %s1098_s2, %s540_s25  ;;  %v96_v31 = vld [vmem:[%s1097_s1 + $0xa] sm:$0x1]  ;;  %v103_v34 = vld [vmem:[%s1097_s1 + $0xb] sm:$0x1]  ;;  %v110_v37 = vld [vmem:[%s1097_s1 + $0xc] sm:$0x1] }
  0x16   :  { %s41_s6 = scalar_lea.vmem %s1098_s2, %s541_s3  ;;  %s549_s21 = sld [smem:[#allocation3 + $0xa]]  ;;  %v117_v40 = vld [vmem:[%s1097_s1 + $0xd] sm:$0x1]  ;;  %v124_v43 = vld [vmem:[%s1097_s1 + $0xe] sm:$0x1] }
  0x17   :  { %s48_s12 = scalar_lea.vmem %s1098_s2, %s542_s9  ;;  %s550_s27 = sld [smem:[#allocation3 + $0xb]]  ;;  %v131_v46 = vld [vmem:[%s1097_s1 + $0xf] sm:$0x1]  ;;  %v138_v49 = vld [vmem:[%s1097_s1 + $0x10] sm:$0x1] }
  0x18   :  { %v27_v2 = vld [vmem:[%s26_s24] sm:$0x1]  ;;  %s55_s17 = scalar_lea.vmem %s1098_s2, %s543_s15  ;;  %s62_s23 = scalar_lea.vmem %s1098_s2, %s544_s20  ;;  %v145_v52 = vld [vmem:[%s1097_s1 + $0x11] sm:$0x1]  ;;  %v152_v55 = vld [vmem:[%s1097_s1 + $0x12] sm:$0x1] }
  0x19   :  { %v28_v3 = vadd.f32 %v27_v2, %v25_v1  ;;  %s69_s29 = scalar_lea.vmem %s1098_s2, %s545_s26  ;;  %s76_s7 = scalar_lea.vmem %s1098_s2, %s546_s4  ;;  %v159_v58 = vld [vmem:[%s1097_s1 + $0x13] sm:$0x1]  ;;  %v166_v61 = vld [vmem:[%s1097_s1 + $0x14] sm:$0x1]  ;;  %v173_v0 = vld [vmem:[%s1097_s1 + $0x15] sm:$0x1] }
  0x1a   :  { %s83_s13 = scalar_lea.vmem %s1098_s2, %s547_s10  ;;  %s90_s18 = scalar_lea.vmem %s1098_s2, %s548_s16 }
  0x1b   :  { %30 = vst.msk [vmem:[%s26_s24] sm:$0x1] %vm29_vm1, %v28_v3  ;;  %s551_s5 = sld [smem:[#allocation3 + $0xc]]  ;;  %s552_s11 = sld [smem:[#allocation3 + $0xd]]  ;;  %v180_v3 = vld [vmem:[%s1097_s1 + $0x16] sm:$0x1] }
  0x1c   :  { %s97_s24 = scalar_lea.vmem %s1098_s2, %s549_s21  ;;  %s553_s0 = sld [smem:[#allocation3 + $0xe]] }
  0x1d   :  { %s104_s30 = scalar_lea.vmem %s1098_s2, %s550_s27  ;;  %s554_s22 = sld [smem:[#allocation3 + $0xf]] }
  0x21   :  { %s111_s8 = scalar_lea.vmem %s1098_s2, %s551_s5  ;;  %s118_s14 = scalar_lea.vmem %s1098_s2, %s552_s11 }
  0x22   :  { %v35_v5 = vld [vmem:[%s34_s28] sm:$0x1]  ;;  %s125_s19 = scalar_lea.vmem %s1098_s2, %s553_s0 }
  0x23   :  { %v36_v6 = vadd.f32 %v35_v5, %v33_v4  ;;  %s132_s25 = scalar_lea.vmem %s1098_s2, %s554_s22 }
  0x25   :  { %37 = vst.msk [vmem:[%s34_s28] sm:$0x1] %vm29_vm1, %v36_v6  ;;  %s555_s28 = sld [smem:[#allocation3 + $0x10]]  ;;  %v187_v6 = vld [vmem:[%s1097_s1 + $0x17] sm:$0x1] }
  0x2b   :  { %s139_s3 = scalar_lea.vmem %s1098_s2, %s555_s28 }
  0x2c   :  { %v42_v8 = vld [vmem:[%s41_s6] sm:$0x1] }
  0x2d   :  { %v43_v9 = vadd.f32 %v42_v8, %v40_v7 }
  0x2f   :  { %44 = vst.msk [vmem:[%s41_s6] sm:$0x1] %vm29_vm1, %v43_v9  ;;  %s556_s6 = sld [smem:[#allocation3 + $0x11]]  ;;  %v194_v9 = vld [vmem:[%s1097_s1 + $0x18] sm:$0x1] }
  0x35   :  { %s146_s9 = scalar_lea.vmem %s1098_s2, %s556_s6 }
  0x36   :  { %v49_v11 = vld [vmem:[%s48_s12] sm:$0x1] }
  0x37   :  { %v50_v12 = vadd.f32 %v49_v11, %v47_v10 }
  0x39   :  { %51 = vst.msk [vmem:[%s48_s12] sm:$0x1] %vm29_vm1, %v50_v12  ;;  %s557_s12 = sld [smem:[#allocation3 + $0x12]]  ;;  %v201_v12 = vld [vmem:[%s1097_s1 + $0x19] sm:$0x1] }
  0x3f   :  { %s153_s15 = scalar_lea.vmem %s1098_s2, %s557_s12 }
  0x40   :  { %v56_v14 = vld [vmem:[%s55_s17] sm:$0x1] }
  0x41   :  { %v57_v15 = vadd.f32 %v56_v14, %v54_v13 }
  0x43   :  { %58 = vst.msk [vmem:[%s55_s17] sm:$0x1] %vm29_vm1, %v57_v15  ;;  %s558_s17 = sld [smem:[#allocation3 + $0x13]]  ;;  %v208_v15 = vld [vmem:[%s1097_s1 + $0x1a] sm:$0x1] }
  0x49   :  { %s160_s20 = scalar_lea.vmem %s1098_s2, %s558_s17 }
  0x4a   :  { %v63_v17 = vld [vmem:[%s62_s23] sm:$0x1] }
  0x4b   :  { %v64_v18 = vadd.f32 %v63_v17, %v61_v16 }
  0x4d   :  { %65 = vst.msk [vmem:[%s62_s23] sm:$0x1] %vm29_vm1, %v64_v18  ;;  %s559_s23 = sld [smem:[#allocation3 + $0x14]]  ;;  %v215_v18 = vld [vmem:[%s1097_s1 + $0x1b] sm:$0x1] }
  0x53   :  { %s167_s26 = scalar_lea.vmem %s1098_s2, %s559_s23 }
  0x54   :  { %v70_v20 = vld [vmem:[%s69_s29] sm:$0x1] }
  0x55   :  { %v71_v21 = vadd.f32 %v70_v20, %v68_v19 }
  0x57   :  { %72 = vst.msk [vmem:[%s69_s29] sm:$0x1] %vm29_vm1, %v71_v21  ;;  %s560_s29 = sld [smem:[#allocation3 + $0x15]]  ;;  %v222_v21 = vld [vmem:[%s1097_s1 + $0x1c] sm:$0x1] }
  0x5d   :  { %s174_s4 = scalar_lea.vmem %s1098_s2, %s560_s29 }
  0x5e   :  { %v77_v23 = vld [vmem:[%s76_s7] sm:$0x1] }
  0x5f   :  { %v78_v24 = vadd.f32 %v77_v23, %v75_v22 }
  0x61   :  { %79 = vst.msk [vmem:[%s76_s7] sm:$0x1] %vm29_vm1, %v78_v24  ;;  %s561_s7 = sld [smem:[#allocation3 + $0x16]]  ;;  %v229_v24 = vld [vmem:[%s1097_s1 + $0x1d] sm:$0x1] }
  0x67   :  { %s181_s10 = scalar_lea.vmem %s1098_s2, %s561_s7 }
  0x68   :  { %v84_v26 = vld [vmem:[%s83_s13] sm:$0x1] }
  0x69   :  { %v85_v27 = vadd.f32 %v84_v26, %v82_v25 }
  0x6b   :  { %86 = vst.msk [vmem:[%s83_s13] sm:$0x1] %vm29_vm1, %v85_v27  ;;  %s562_s13 = sld [smem:[#allocation3 + $0x17]]  ;;  %v236_v27 = vld [vmem:[%s1097_s1 + $0x1e] sm:$0x1] }
  0x71   :  { %s188_s16 = scalar_lea.vmem %s1098_s2, %s562_s13 }
  0x72   :  { %v91_v29 = vld [vmem:[%s90_s18] sm:$0x1] }
  0x73   :  { %v92_v30 = vadd.f32 %v91_v29, %v89_v28 }
  0x75   :  { %93 = vst.msk [vmem:[%s90_s18] sm:$0x1] %vm29_vm1, %v92_v30  ;;  %s563_s18 = sld [smem:[#allocation3 + $0x18]]  ;;  %v243_v30 = vld [vmem:[%s1097_s1 + $0x1f] sm:$0x1] }
  0x7b   :  { %s195_s21 = scalar_lea.vmem %s1098_s2, %s563_s18 }
  0x7c   :  { %v98_v32 = vld [vmem:[%s97_s24] sm:$0x1] }
  0x7d   :  { %v99_v33 = vadd.f32 %v98_v32, %v96_v31 }
  0x7f   :  { %100 = vst.msk [vmem:[%s97_s24] sm:$0x1] %vm29_vm1, %v99_v33  ;;  %s564_s24 = sld [smem:[#allocation3 + $0x19]]  ;;  %v250_v33 = vld [vmem:[%s1097_s1 + $0x20] sm:$0x1] }
  0x85   :  { %s202_s27 = scalar_lea.vmem %s1098_s2, %s564_s24 }
  0x86   :  { %v105_v35 = vld [vmem:[%s104_s30] sm:$0x1] }
  0x87   :  { %v106_v36 = vadd.f32 %v105_v35, %v103_v34 }
  0x89   :  { %107 = vst.msk [vmem:[%s104_s30] sm:$0x1] %vm29_vm1, %v106_v36  ;;  %s565_s30 = sld [smem:[#allocation3 + $0x1a]]  ;;  %v257_v36 = vld [vmem:[%s1097_s1 + $0x21] sm:$0x1] }
  0x8f   :  { %s209_s5 = scalar_lea.vmem %s1098_s2, %s565_s30 }
  0x90   :  { %v112_v38 = vld [vmem:[%s111_s8] sm:$0x1] }
  0x91   :  { %v113_v39 = vadd.f32 %v112_v38, %v110_v37 }
  0x93   :  { %114 = vst.msk [vmem:[%s111_s8] sm:$0x1] %vm29_vm1, %v113_v39  ;;  %s566_s8 = sld [smem:[#allocation3 + $0x1b]]  ;;  %v264_v39 = vld [vmem:[%s1097_s1 + $0x22] sm:$0x1] }
  0x99   :  { %s216_s11 = scalar_lea.vmem %s1098_s2, %s566_s8 }
  0x9a   :  { %v119_v41 = vld [vmem:[%s118_s14] sm:$0x1] }
  0x9b   :  { %v120_v42 = vadd.f32 %v119_v41, %v117_v40 }
  0x9d   :  { %121 = vst.msk [vmem:[%s118_s14] sm:$0x1] %vm29_vm1, %v120_v42  ;;  %s567_s14 = sld [smem:[#allocation3 + $0x1c]]  ;;  %v271_v42 = vld [vmem:[%s1097_s1 + $0x23] sm:$0x1] }
  0xa3   :  { %s223_s0 = scalar_lea.vmem %s1098_s2, %s567_s14 }
  0xa4   :  { %v126_v44 = vld [vmem:[%s125_s19] sm:$0x1] }
  0xa5   :  { %v127_v45 = vadd.f32 %v126_v44, %v124_v43 }
  0xa7   :  { %128 = vst.msk [vmem:[%s125_s19] sm:$0x1] %vm29_vm1, %v127_v45  ;;  %s568_s19 = sld [smem:[#allocation3 + $0x1d]]  ;;  %v278_v45 = vld [vmem:[%s1097_s1 + $0x24] sm:$0x1] }
  0xad   :  { %s230_s22 = scalar_lea.vmem %s1098_s2, %s568_s19 }
  0xae   :  { %v133_v47 = vld [vmem:[%s132_s25] sm:$0x1] }
  0xaf   :  { %v134_v48 = vadd.f32 %v133_v47, %v131_v46 }
  0xb1   :  { %135 = vst.msk [vmem:[%s132_s25] sm:$0x1] %vm29_vm1, %v134_v48  ;;  %s569_s25 = sld [smem:[#allocation3 + $0x1e]]  ;;  %v285_v48 = vld [vmem:[%s1097_s1 + $0x25] sm:$0x1] }
  0xb7   :  { %s237_s28 = scalar_lea.vmem %s1098_s2, %s569_s25 }
  0xb8   :  { %v140_v50 = vld [vmem:[%s139_s3] sm:$0x1] }
  0xb9   :  { %v141_v51 = vadd.f32 %v140_v50, %v138_v49 }
  0xbb   :  { %142 = vst.msk [vmem:[%s139_s3] sm:$0x1] %vm29_vm1, %v141_v51  ;;  %s570_s3 = sld [smem:[#allocation3 + $0x1f]]  ;;  %v292_v51 = vld [vmem:[%s1097_s1 + $0x26] sm:$0x1] }
  0xc1   :  { %s244_s6 = scalar_lea.vmem %s1098_s2, %s570_s3 }
  0xc2   :  { %v147_v53 = vld [vmem:[%s146_s9] sm:$0x1] }
  0xc3   :  { %v148_v54 = vadd.f32 %v147_v53, %v145_v52 }
  0xc5   :  { %149 = vst.msk [vmem:[%s146_s9] sm:$0x1] %vm29_vm1, %v148_v54  ;;  %s571_s9 = sld [smem:[#allocation3 + $0x20]]  ;;  %v299_v54 = vld [vmem:[%s1097_s1 + $0x27] sm:$0x1] }
  0xcb   :  { %s251_s12 = scalar_lea.vmem %s1098_s2, %s571_s9 }
  0xcc   :  { %v154_v56 = vld [vmem:[%s153_s15] sm:$0x1] }
  0xcd   :  { %v155_v57 = vadd.f32 %v154_v56, %v152_v55 }
  0xcf   :  { %156 = vst.msk [vmem:[%s153_s15] sm:$0x1] %vm29_vm1, %v155_v57  ;;  %s572_s15 = sld [smem:[#allocation3 + $0x21]]  ;;  %v306_v57 = vld [vmem:[%s1097_s1 + $0x28] sm:$0x1] }
  0xd5   :  { %s258_s17 = scalar_lea.vmem %s1098_s2, %s572_s15 }
  0xd6   :  { %v161_v59 = vld [vmem:[%s160_s20] sm:$0x1] }
  0xd7   :  { %v162_v60 = vadd.f32 %v161_v59, %v159_v58 }
  0xd9   :  { %163 = vst.msk [vmem:[%s160_s20] sm:$0x1] %vm29_vm1, %v162_v60  ;;  %s573_s20 = sld [smem:[#allocation3 + $0x22]]  ;;  %v313_v60 = vld [vmem:[%s1097_s1 + $0x29] sm:$0x1] }
  0xdf   :  { %s265_s23 = scalar_lea.vmem %s1098_s2, %s573_s20 }
  0xe0   :  { %v168_v62 = vld [vmem:[%s167_s26] sm:$0x1] }
  0xe1   :  { %v169_v63 = vadd.f32 %v168_v62, %v166_v61 }
  0xe3   :  { %170 = vst.msk [vmem:[%s167_s26] sm:$0x1] %vm29_vm1, %v169_v63  ;;  %s574_s26 = sld [smem:[#allocation3 + $0x23]]  ;;  %v320_v63 = vld [vmem:[%s1097_s1 + $0x2a] sm:$0x1] }
  0xe9   :  { %s272_s29 = scalar_lea.vmem %s1098_s2, %s574_s26 }
  0xea   :  { %v175_v1 = vld [vmem:[%s174_s4] sm:$0x1] }
  0xeb   :  { %v176_v2 = vadd.f32 %v175_v1, %v173_v0 }
  0xed   :  { %177 = vst.msk [vmem:[%s174_s4] sm:$0x1] %vm29_vm1, %v176_v2  ;;  %s575_s4 = sld [smem:[#allocation3 + $0x24]]  ;;  %v327_v2 = vld [vmem:[%s1097_s1 + $0x2b] sm:$0x1] }
  0xf3   :  { %s279_s7 = scalar_lea.vmem %s1098_s2, %s575_s4 }
  0xf4   :  { %v182_v4 = vld [vmem:[%s181_s10] sm:$0x1] }
  0xf5   :  { %v183_v5 = vadd.f32 %v182_v4, %v180_v3 }
  0xf7   :  { %184 = vst.msk [vmem:[%s181_s10] sm:$0x1] %vm29_vm1, %v183_v5  ;;  %s576_s10 = sld [smem:[#allocation3 + $0x25]]  ;;  %v334_v5 = vld [vmem:[%s1097_s1 + $0x2c] sm:$0x1] }
  0xfd   :  { %s286_s13 = scalar_lea.vmem %s1098_s2, %s576_s10 }
  0xfe   :  { %v189_v7 = vld [vmem:[%s188_s16] sm:$0x1] }
  0xff   :  { %v190_v8 = vadd.f32 %v189_v7, %v187_v6 }
 0x101   :  { %191 = vst.msk [vmem:[%s188_s16] sm:$0x1] %vm29_vm1, %v190_v8  ;;  %s577_s16 = sld [smem:[#allocation3 + $0x26]]  ;;  %v341_v8 = vld [vmem:[%s1097_s1 + $0x2d] sm:$0x1] }
 0x107   :  { %s293_s18 = scalar_lea.vmem %s1098_s2, %s577_s16 }
 0x108   :  { %v196_v10 = vld [vmem:[%s195_s21] sm:$0x1] }
 0x109   :  { %v197_v11 = vadd.f32 %v196_v10, %v194_v9 }
 0x10b   :  { %198 = vst.msk [vmem:[%s195_s21] sm:$0x1] %vm29_vm1, %v197_v11  ;;  %s578_s21 = sld [smem:[#allocation3 + $0x27]]  ;;  %v348_v11 = vld [vmem:[%s1097_s1 + $0x2e] sm:$0x1] }
 0x111   :  { %s300_s24 = scalar_lea.vmem %s1098_s2, %s578_s21 }
 0x112   :  { %v203_v13 = vld [vmem:[%s202_s27] sm:$0x1] }
 0x113   :  { %v204_v14 = vadd.f32 %v203_v13, %v201_v12 }
 0x115   :  { %205 = vst.msk [vmem:[%s202_s27] sm:$0x1] %vm29_vm1, %v204_v14  ;;  %s579_s27 = sld [smem:[#allocation3 + $0x28]]  ;;  %v355_v14 = vld [vmem:[%s1097_s1 + $0x2f] sm:$0x1] }
 0x11b   :  { %s307_s30 = scalar_lea.vmem %s1098_s2, %s579_s27 }
 0x11c   :  { %v210_v16 = vld [vmem:[%s209_s5] sm:$0x1] }
 0x11d   :  { %v211_v17 = vadd.f32 %v210_v16, %v208_v15 }
 0x11f   :  { %212 = vst.msk [vmem:[%s209_s5] sm:$0x1] %vm29_vm1, %v211_v17  ;;  %s580_s5 = sld [smem:[#allocation3 + $0x29]]  ;;  %v362_v17 = vld [vmem:[%s1097_s1 + $0x30] sm:$0x1] }
 0x125   :  { %s314_s8 = scalar_lea.vmem %s1098_s2, %s580_s5 }
 0x126   :  { %v217_v19 = vld [vmem:[%s216_s11] sm:$0x1] }
 0x127   :  { %v218_v20 = vadd.f32 %v217_v19, %v215_v18 }
 0x129   :  { %219 = vst.msk [vmem:[%s216_s11] sm:$0x1] %vm29_vm1, %v218_v20  ;;  %s581_s11 = sld [smem:[#allocation3 + $0x2a]]  ;;  %v369_v20 = vld [vmem:[%s1097_s1 + $0x31] sm:$0x1] }
 0x12f   :  { %s321_s14 = scalar_lea.vmem %s1098_s2, %s581_s11 }
 0x130   :  { %v224_v22 = vld [vmem:[%s223_s0] sm:$0x1] }
 0x131   :  { %v225_v23 = vadd.f32 %v224_v22, %v222_v21 }
 0x133   :  { %226 = vst.msk [vmem:[%s223_s0] sm:$0x1] %vm29_vm1, %v225_v23  ;;  %s582_s0 = sld [smem:[#allocation3 + $0x2b]]  ;;  %v376_v23 = vld [vmem:[%s1097_s1 + $0x32] sm:$0x1] }
 0x139   :  { %s328_s19 = scalar_lea.vmem %s1098_s2, %s582_s0 }
 0x13a   :  { %v231_v25 = vld [vmem:[%s230_s22] sm:$0x1] }
 0x13b   :  { %v232_v26 = vadd.f32 %v231_v25, %v229_v24 }
 0x13d   :  { %233 = vst.msk [vmem:[%s230_s22] sm:$0x1] %vm29_vm1, %v232_v26  ;;  %s583_s22 = sld [smem:[#allocation3 + $0x2c]]  ;;  %v383_v26 = vld [vmem:[%s1097_s1 + $0x33] sm:$0x1] }
 0x143   :  { %s335_s25 = scalar_lea.vmem %s1098_s2, %s583_s22 }
 0x144   :  { %v238_v28 = vld [vmem:[%s237_s28] sm:$0x1] }
 0x145   :  { %v239_v29 = vadd.f32 %v238_v28, %v236_v27 }
 0x147   :  { %240 = vst.msk [vmem:[%s237_s28] sm:$0x1] %vm29_vm1, %v239_v29  ;;  %s584_s28 = sld [smem:[#allocation3 + $0x2d]]  ;;  %v390_v29 = vld [vmem:[%s1097_s1 + $0x34] sm:$0x1] }
 0x14d   :  { %s342_s3 = scalar_lea.vmem %s1098_s2, %s584_s28 }
 0x14e   :  { %v245_v31 = vld [vmem:[%s244_s6] sm:$0x1] }
 0x14f   :  { %v246_v32 = vadd.f32 %v245_v31, %v243_v30 }
 0x151   :  { %247 = vst.msk [vmem:[%s244_s6] sm:$0x1] %vm29_vm1, %v246_v32  ;;  %s585_s6 = sld [smem:[#allocation3 + $0x2e]]  ;;  %v397_v32 = vld [vmem:[%s1097_s1 + $0x35] sm:$0x1] }
 0x157   :  { %s349_s9 = scalar_lea.vmem %s1098_s2, %s585_s6 }
 0x158   :  { %v252_v34 = vld [vmem:[%s251_s12] sm:$0x1] }
 0x159   :  { %v253_v35 = vadd.f32 %v252_v34, %v250_v33 }
 0x15b   :  { %254 = vst.msk [vmem:[%s251_s12] sm:$0x1] %vm29_vm1, %v253_v35  ;;  %s586_s12 = sld [smem:[#allocation3 + $0x2f]]  ;;  %v404_v35 = vld [vmem:[%s1097_s1 + $0x36] sm:$0x1] }
 0x161   :  { %s356_s15 = scalar_lea.vmem %s1098_s2, %s586_s12 }
 0x162   :  { %v259_v37 = vld [vmem:[%s258_s17] sm:$0x1] }
 0x163   :  { %v260_v38 = vadd.f32 %v259_v37, %v257_v36 }
 0x165   :  { %261 = vst.msk [vmem:[%s258_s17] sm:$0x1] %vm29_vm1, %v260_v38  ;;  %s587_s17 = sld [smem:[#allocation3 + $0x30]]  ;;  %v411_v38 = vld [vmem:[%s1097_s1 + $0x37] sm:$0x1] }
 0x16b   :  { %s363_s20 = scalar_lea.vmem %s1098_s2, %s587_s17 }
 0x16c   :  { %v266_v40 = vld [vmem:[%s265_s23] sm:$0x1] }
 0x16d   :  { %v267_v41 = vadd.f32 %v266_v40, %v264_v39 }
 0x16f   :  { %268 = vst.msk [vmem:[%s265_s23] sm:$0x1] %vm29_vm1, %v267_v41  ;;  %s588_s23 = sld [smem:[#allocation3 + $0x31]]  ;;  %v418_v41 = vld [vmem:[%s1097_s1 + $0x38] sm:$0x1] }
 0x175   :  { %s370_s26 = scalar_lea.vmem %s1098_s2, %s588_s23 }
 0x176   :  { %v273_v43 = vld [vmem:[%s272_s29] sm:$0x1] }
 0x177   :  { %v274_v44 = vadd.f32 %v273_v43, %v271_v42 }
 0x179   :  { %275 = vst.msk [vmem:[%s272_s29] sm:$0x1] %vm29_vm1, %v274_v44  ;;  %s589_s29 = sld [smem:[#allocation3 + $0x32]]  ;;  %v425_v44 = vld [vmem:[%s1097_s1 + $0x39] sm:$0x1] }
 0x17f   :  { %s377_s4 = scalar_lea.vmem %s1098_s2, %s589_s29 }
 0x180   :  { %v280_v46 = vld [vmem:[%s279_s7] sm:$0x1] }
 0x181   :  { %v281_v47 = vadd.f32 %v280_v46, %v278_v45 }
 0x183   :  { %282 = vst.msk [vmem:[%s279_s7] sm:$0x1] %vm29_vm1, %v281_v47  ;;  %s590_s7 = sld [smem:[#allocation3 + $0x33]]  ;;  %v432_v47 = vld [vmem:[%s1097_s1 + $0x3a] sm:$0x1] }
 0x189   :  { %s384_s10 = scalar_lea.vmem %s1098_s2, %s590_s7 }
 0x18a   :  { %v287_v49 = vld [vmem:[%s286_s13] sm:$0x1] }
 0x18b   :  { %v288_v50 = vadd.f32 %v287_v49, %v285_v48 }
 0x18d   :  { %289 = vst.msk [vmem:[%s286_s13] sm:$0x1] %vm29_vm1, %v288_v50  ;;  %s591_s13 = sld [smem:[#allocation3 + $0x34]]  ;;  %v439_v50 = vld [vmem:[%s1097_s1 + $0x3b] sm:$0x1] }
 0x193   :  { %s391_s16 = scalar_lea.vmem %s1098_s2, %s591_s13 }
 0x194   :  { %v294_v52 = vld [vmem:[%s293_s18] sm:$0x1] }
 0x195   :  { %v295_v53 = vadd.f32 %v294_v52, %v292_v51 }
 0x197   :  { %296 = vst.msk [vmem:[%s293_s18] sm:$0x1] %vm29_vm1, %v295_v53  ;;  %s592_s18 = sld [smem:[#allocation3 + $0x35]]  ;;  %v446_v53 = vld [vmem:[%s1097_s1 + $0x3c] sm:$0x1] }
 0x19d   :  { %s398_s21 = scalar_lea.vmem %s1098_s2, %s592_s18 }
 0x19e   :  { %v301_v55 = vld [vmem:[%s300_s24] sm:$0x1] }
 0x19f   :  { %v302_v56 = vadd.f32 %v301_v55, %v299_v54 }
 0x1a1   :  { %303 = vst.msk [vmem:[%s300_s24] sm:$0x1] %vm29_vm1, %v302_v56  ;;  %s593_s24 = sld [smem:[#allocation3 + $0x36]]  ;;  %v453_v56 = vld [vmem:[%s1097_s1 + $0x3d] sm:$0x1] }
 0x1a7   :  { %s405_s27 = scalar_lea.vmem %s1098_s2, %s593_s24 }
 0x1a8   :  { %v308_v58 = vld [vmem:[%s307_s30] sm:$0x1] }
 0x1a9   :  { %v309_v59 = vadd.f32 %v308_v58, %v306_v57 }
 0x1ab   :  { %310 = vst.msk [vmem:[%s307_s30] sm:$0x1] %vm29_vm1, %v309_v59  ;;  %s594_s30 = sld [smem:[#allocation3 + $0x37]]  ;;  %v460_v59 = vld [vmem:[%s1097_s1 + $0x3e] sm:$0x1] }
 0x1b1   :  { %s412_s5 = scalar_lea.vmem %s1098_s2, %s594_s30 }
 0x1b2   :  { %v315_v61 = vld [vmem:[%s314_s8] sm:$0x1] }
 0x1b3   :  { %v316_v62 = vadd.f32 %v315_v61, %v313_v60 }
 0x1b5   :  { %317 = vst.msk [vmem:[%s314_s8] sm:$0x1] %vm29_vm1, %v316_v62  ;;  %s595_s8 = sld [smem:[#allocation3 + $0x38]]  ;;  %v467_v62 = vld [vmem:[%s1097_s1 + $0x3f] sm:$0x1] }
 0x1bb   :  { %s419_s11 = scalar_lea.vmem %s1098_s2, %s595_s8 }
 0x1bc   :  { %v322_v0 = vld [vmem:[%s321_s14] sm:$0x1] }
 0x1bd   :  { %v323_v1 = vadd.f32 %v322_v0, %v320_v63 }
 0x1bf   :  { %324 = vst.msk [vmem:[%s321_s14] sm:$0x1] %vm29_vm1, %v323_v1  ;;  %s596_s14 = sld [smem:[#allocation3 + $0x39]] }
 0x1c5   :  { %s426_s0 = scalar_lea.vmem %s1098_s2, %s596_s14 }
 0x1c6   :  { %v329_v3 = vld [vmem:[%s328_s19] sm:$0x1] }
 0x1c7   :  { %v330_v4 = vadd.f32 %v329_v3, %v327_v2 }
 0x1c9   :  { %331 = vst.msk [vmem:[%s328_s19] sm:$0x1] %vm29_vm1, %v330_v4  ;;  %s597_s19 = sld [smem:[#allocation3 + $0x3a]] }
 0x1cf   :  { %s433_s22 = scalar_lea.vmem %s1098_s2, %s597_s19 }
 0x1d0   :  { %v336_v6 = vld [vmem:[%s335_s25] sm:$0x1] }
 0x1d1   :  { %v337_v7 = vadd.f32 %v336_v6, %v334_v5 }
 0x1d3   :  { %338 = vst.msk [vmem:[%s335_s25] sm:$0x1] %vm29_vm1, %v337_v7  ;;  %s598_s25 = sld [smem:[#allocation3 + $0x3b]] }
 0x1d9   :  { %s440_s28 = scalar_lea.vmem %s1098_s2, %s598_s25 }
 0x1da   :  { %v343_v9 = vld [vmem:[%s342_s3] sm:$0x1] }
 0x1db   :  { %v344_v10 = vadd.f32 %v343_v9, %v341_v8 }
 0x1dd   :  { %345 = vst.msk [vmem:[%s342_s3] sm:$0x1] %vm29_vm1, %v344_v10  ;;  %s599_s3 = sld [smem:[#allocation3 + $0x3c]] }
 0x1e3   :  { %s447_s6 = scalar_lea.vmem %s1098_s2, %s599_s3 }
 0x1e4   :  { %v350_v12 = vld [vmem:[%s349_s9] sm:$0x1] }
 0x1e5   :  { %v351_v13 = vadd.f32 %v350_v12, %v348_v11 }
 0x1e7   :  { %352 = vst.msk [vmem:[%s349_s9] sm:$0x1] %vm29_vm1, %v351_v13  ;;  %s600_s9 = sld [smem:[#allocation3 + $0x3d]] }
 0x1ed   :  { %s454_s12 = scalar_lea.vmem %s1098_s2, %s600_s9 }
 0x1ee   :  { %v357_v15 = vld [vmem:[%s356_s15] sm:$0x1] }
 0x1ef   :  { %v358_v16 = vadd.f32 %v357_v15, %v355_v14 }
 0x1f1   :  { %359 = vst.msk [vmem:[%s356_s15] sm:$0x1] %vm29_vm1, %v358_v16  ;;  %s601_s15 = sld [smem:[#allocation3 + $0x3e]] }
 0x1f7   :  { %s461_s17 = scalar_lea.vmem %s1098_s2, %s601_s15 }
 0x1f8   :  { %v364_v18 = vld [vmem:[%s363_s20] sm:$0x1] }
 0x1f9   :  { %v365_v19 = vadd.f32 %v364_v18, %v362_v17 }
 0x1fb   :  { %366 = vst.msk [vmem:[%s363_s20] sm:$0x1] %vm29_vm1, %v365_v19  ;;  %s602_s20 = sld [smem:[#allocation3 + $0x3f]] }
 0x201   :  { %s468_s23 = scalar_lea.vmem %s1098_s2, %s602_s20 }
 0x202   :  { %v371_v21 = vld [vmem:[%s370_s26] sm:$0x1] }
 0x203   :  { %v372_v22 = vadd.f32 %v371_v21, %v369_v20 }
 0x205   :  { %373 = vst.msk [vmem:[%s370_s26] sm:$0x1] %vm29_vm1, %v372_v22 }
 0x20c   :  { %v378_v24 = vld [vmem:[%s377_s4] sm:$0x1] }
 0x20d   :  { %v379_v25 = vadd.f32 %v378_v24, %v376_v23 }
 0x20f   :  { %380 = vst.msk [vmem:[%s377_s4] sm:$0x1] %vm29_vm1, %v379_v25 }
 0x216   :  { %v385_v27 = vld [vmem:[%s384_s10] sm:$0x1] }
 0x217   :  { %v386_v28 = vadd.f32 %v385_v27, %v383_v26 }
 0x219   :  { %387 = vst.msk [vmem:[%s384_s10] sm:$0x1] %vm29_vm1, %v386_v28 }
 0x220   :  { %v392_v30 = vld [vmem:[%s391_s16] sm:$0x1] }
 0x221   :  { %v393_v31 = vadd.f32 %v392_v30, %v390_v29 }
 0x223   :  { %394 = vst.msk [vmem:[%s391_s16] sm:$0x1] %vm29_vm1, %v393_v31 }
 0x22a   :  { %v399_v33 = vld [vmem:[%s398_s21] sm:$0x1] }
 0x22b   :  { %v400_v34 = vadd.f32 %v399_v33, %v397_v32 }
 0x22d   :  { %401 = vst.msk [vmem:[%s398_s21] sm:$0x1] %vm29_vm1, %v400_v34 }
 0x234   :  { %v406_v36 = vld [vmem:[%s405_s27] sm:$0x1] }
 0x235   :  { %v407_v37 = vadd.f32 %v406_v36, %v404_v35 }
 0x237   :  { %408 = vst.msk [vmem:[%s405_s27] sm:$0x1] %vm29_vm1, %v407_v37 }
 0x23e   :  { %v413_v39 = vld [vmem:[%s412_s5] sm:$0x1] }
 0x23f   :  { %v414_v40 = vadd.f32 %v413_v39, %v411_v38 }
 0x241   :  { %415 = vst.msk [vmem:[%s412_s5] sm:$0x1] %vm29_vm1, %v414_v40 }
 0x248   :  { %v420_v42 = vld [vmem:[%s419_s11] sm:$0x1] }
 0x249   :  { %v421_v43 = vadd.f32 %v420_v42, %v418_v41 }
 0x24b   :  { %422 = vst.msk [vmem:[%s419_s11] sm:$0x1] %vm29_vm1, %v421_v43 }
 0x252   :  { %v427_v45 = vld [vmem:[%s426_s0] sm:$0x1] }
 0x253   :  { %v428_v46 = vadd.f32 %v427_v45, %v425_v44 }
 0x255   :  { %429 = vst.msk [vmem:[%s426_s0] sm:$0x1] %vm29_vm1, %v428_v46 }
 0x25c   :  { %v434_v48 = vld [vmem:[%s433_s22] sm:$0x1] }
 0x25d   :  { %v435_v49 = vadd.f32 %v434_v48, %v432_v47 }
 0x25f   :  { %436 = vst.msk [vmem:[%s433_s22] sm:$0x1] %vm29_vm1, %v435_v49 }
 0x266   :  { %v441_v51 = vld [vmem:[%s440_s28] sm:$0x1] }
 0x267   :  { %v442_v52 = vadd.f32 %v441_v51, %v439_v50 }
 0x269   :  { %443 = vst.msk [vmem:[%s440_s28] sm:$0x1] %vm29_vm1, %v442_v52 }
 0x270   :  { %v448_v54 = vld [vmem:[%s447_s6] sm:$0x1] }
 0x271   :  { %v449_v55 = vadd.f32 %v448_v54, %v446_v53 }
 0x273   :  { %450 = vst.msk [vmem:[%s447_s6] sm:$0x1] %vm29_vm1, %v449_v55 }
 0x27a   :  { %v455_v57 = vld [vmem:[%s454_s12] sm:$0x1] }
 0x27b   :  { %v456_v58 = vadd.f32 %v455_v57, %v453_v56 }
 0x27d   :  { %457 = vst.msk [vmem:[%s454_s12] sm:$0x1] %vm29_vm1, %v456_v58 }
 0x284   :  { %v462_v60 = vld [vmem:[%s461_s17] sm:$0x1] }
 0x285   :  { %v463_v61 = vadd.f32 %v462_v60, %v460_v59 }
 0x287   :  { %464 = vst.msk [vmem:[%s461_s17] sm:$0x1] %vm29_vm1, %v463_v61 }
 0x28e   :  { %v469_v63 = vld [vmem:[%s468_s23] sm:$0x1] }
 0x28f   :  { %v470_v0 = vadd.f32 %v469_v63, %v467_v62 }
 0x291   :  { %471 = vst.msk [vmem:[%s468_s23] sm:$0x1] %vm29_vm1, %v470_v0 }

</bundles_post_ra>
